<compile_context>
chip_gen: v6e
topology: v6e:2x2x1
jax: 0.10.0
libtpu: 0.0.40
codegen_flags: <defaults>
</compile_context>

<pallas_src>
import functools

import jax
import jax.numpy as jnp
from jax.experimental import pallas as pl
from jax.experimental.pallas import tpu as pltpu


def mha_flash_kernel(xq_ref, xkv_ref, wq_ref, bq_ref, wkv_ref, bkv_ref,
                     wproj_ref, bproj_ref, o_ref,
                     q_scratch, m_scratch, l_scratch, acc_scratch,
                     *, n_heads, head_dim):
    # xq_ref:    (1, TQ, C)   rows of x for this query tile
    # xkv_ref:   (1, TK, C)   rows of x for this key/value tile
    # wq_ref:    (C, C)       q projection, 1/sqrt(hd) pre-folded
    # bq_ref:    (1, C)       f32, pre-scaled
    # wkv_ref:   (C, 2C)      [k | v] projection
    # bkv_ref:   (1, 2C)      f32
    # wproj_ref: (C, C_pad)   output projection, lane-padded
    # bproj_ref: (1, C_pad)   f32
    # o_ref:     (1, TQ, C_pad)
    # scratch:   q (TQ, C) in x.dtype, m/l (H, TQ, 1) f32, acc (TQ, C) f32
    H, hd = n_heads, head_dim
    C = H * hd
    ki = pl.program_id(2)
    nk = pl.num_programs(2)
    cdt = xq_ref.dtype                      # MXU operand dtype (bf16 model -> bf16 operands)

    # ---- init (once per (batch, q-tile)): Q projection + online-softmax state ----
    @pl.when(ki == 0)
    def _init():
        xq = xq_ref[0]                                                    # (TQ, C)
        q = jnp.dot(xq, wq_ref[...],
                    preferred_element_type=jnp.float32) + bq_ref[...]     # single deep matmul
        q_scratch[...] = q.astype(cdt)                                    # lane-packed, pre-scaled
        m_scratch[...] = jnp.full(m_scratch.shape, -jnp.inf, jnp.float32)
        l_scratch[...] = jnp.zeros(l_scratch.shape, jnp.float32)
        acc_scratch[...] = jnp.zeros(acc_scratch.shape, jnp.float32)

    # ---- K/V projection for this kv tile: one deep (TK, C) @ (C, 2C) matmul ----
    xkv = xkv_ref[0]                                                      # (TK, C)
    kv = jnp.dot(xkv, wkv_ref[...],
                 preferred_element_type=jnp.float32) + bkv_ref[...]       # (TK, 2C) f32
    kvc = kv.astype(cdt)                                                  # lane-packed k|v

    # ---- per-head attention with online softmax (softmax math in f32) ----
    # Heads are sliced only here, where the attention matmuls require it.
    # NOTE(v6e/v7x): score-matmul contraction depth is hd; shallow for hd < 256.
    for h in range(H):                                    # static unroll (H is small/static)
        lo = h * hd
        q_h = q_scratch[:, lo:lo + hd]                                    # (TQ, hd)
        k_h = kvc[:, lo:lo + hd]                                          # (TK, hd)
        v_h = kvc[:, C + lo:C + lo + hd]                                  # (TK, hd)

        s = jnp.einsum("qd,kd->qk", q_h, k_h,
                       preferred_element_type=jnp.float32)                # (TQ, TK) f32

        m_prev = m_scratch[h]                                             # (TQ, 1)
        m_new = jnp.maximum(m_prev, jnp.max(s, axis=-1, keepdims=True))
        alpha = jnp.exp(m_prev - m_new)
        p = jnp.exp(s - m_new)                                            # f32
        l_scratch[h] = alpha * l_scratch[h] + jnp.sum(p, axis=-1, keepdims=True)
        pv = jnp.dot(p.astype(cdt), v_h,
                     preferred_element_type=jnp.float32)                  # (TQ, hd) f32
        acc_scratch[:, lo:lo + hd] = alpha * acc_scratch[:, lo:lo + hd] + pv
        m_scratch[h] = m_new
        # attention_dropout: identity in eval mode

    # ---- finalize: normalize + output projection (single matmul, contraction depth C) ----
    @pl.when(ki == nk - 1)
    def _finalize():
        for h in range(H):
            lo = h * hd
            inv = pl.reciprocal(l_scratch[h], approx=True)                # EUP reciprocal
            acc_scratch[:, lo:lo + hd] = acc_scratch[:, lo:lo + hd] * inv
        o_heads = acc_scratch[...].astype(cdt)                            # (TQ, C) lane-packed
        out = jnp.dot(o_heads, wproj_ref[...],
                      preferred_element_type=jnp.float32) + bproj_ref[...]
        # projection_dropout: identity in eval mode
        o_ref[0] = out.astype(o_ref.dtype)                                # lane-dense store


def _round_up(n, m):
    return (n + m - 1) // m * m


def multi_head_attention(x, w_qkv, b_qkv, w_proj, b_proj, n_heads,
                         q_tile=256, kv_tile=256):
    """x: [B, T, C]; w_qkv: [C, 3C]; b_qkv: [3C]; w_proj: [C, C]; b_proj: [C]."""
    B, T, C = x.shape
    assert C % n_heads == 0
    H = n_heads
    hd = C // H
    scale = 1.0 / (hd ** 0.5)
    dt = x.dtype

    # --- wrapper-side (one-off) weight re-layout ---
    # Split the fused QKV weight into q (used once per q-tile) and kv (used per kv-tile);
    # fold the 1/sqrt(hd) scale into the q columns/bias (free at runtime).
    w_q = (w_qkv[:, :C] * scale).astype(dt)                               # (C, C)
    w_kv = w_qkv[:, C:].astype(dt)                                        # (C, 2C)
    b_q = (b_qkv[:C] * scale).astype(jnp.float32).reshape(1, C)
    b_kv = b_qkv[C:].astype(jnp.float32).reshape(1, 2 * C)

    # Lane-dense output: pad projection output channels to a multiple of 128.
    C_pad = _round_up(C, 128)
    w_proj_p = jnp.pad(w_proj, ((0, 0), (0, C_pad - C))).astype(dt)       # (C, C_pad)
    b_proj_p = jnp.pad(b_proj, (0, C_pad - C)).astype(jnp.float32).reshape(1, C_pad)

    # Tile sizes (re-derive for v7x's 64 MiB VMEM if raising these).
    TQ = T if T <= q_tile else q_tile
    TK = T if T <= kv_tile else kv_tile
    assert T % TQ == 0 and T % TK == 0
    grid = (B, T // TQ, T // TK)

    kernel = functools.partial(mha_flash_kernel, n_heads=H, head_dim=hd)

    def _build(single_buffer_weights):
        def wspec(shape):
            nd = len(shape)
            if single_buffer_weights:
                # grid-invariant weights: single-buffered -> half the VMEM footprint
                return pl.BlockSpec(shape, lambda b, qi, ki: (0,) * nd,
                                    pipeline_mode=pl.Buffered(1))
            return pl.BlockSpec(shape, lambda b, qi, ki: (0,) * nd)

        grid_spec = pltpu.PrefetchScalarGridSpec(
            num_scalar_prefetch=0,
            grid=grid,                     # (batch, q-tiles, kv-tiles)
            in_specs=[
                pl.BlockSpec((1, TQ, C), lambda b, qi, ki: (b, qi, 0)),   # x rows for q
                pl.BlockSpec((1, TK, C), lambda b, qi, ki: (b, ki, 0)),   # x rows for k/v
                wspec((C, C)),            # W_q  (scale folded)
                wspec((1, C)),            # b_q
                wspec((C, 2 * C)),        # W_kv
                wspec((1, 2 * C)),        # b_kv
                wspec((C, C_pad)),        # W_proj (lane-padded)
                wspec((1, C_pad)),        # b_proj
            ],
            out_specs=pl.BlockSpec((1, TQ, C_pad), lambda b, qi, ki: (b, qi, 0)),
            scratch_shapes=[
                pltpu.VMEM((TQ, C), dt),              # q (lane-packed, pre-scaled)
                pltpu.VMEM((H, TQ, 1), jnp.float32),  # running max  m
                pltpu.VMEM((H, TQ, 1), jnp.float32),  # running sum  l
                pltpu.VMEM((TQ, C), jnp.float32),     # output accumulator (lane-packed)
            ],
        )
        return pl.pallas_call(
            kernel,
            out_shape=jax.ShapeDtypeStruct((B, T, C_pad), dt),
            grid_spec=grid_spec,
            compiler_params=pltpu.CompilerParams(
                dimension_semantics=("parallel", "parallel", "arbitrary"),
                vmem_limit_bytes=32 * 1024 * 1024,    # explicit budget, safe on v7x (64 MiB)
            ),
        )

    args = (x, x, w_q, b_q, w_kv, b_kv, w_proj_p, b_proj_p)
    try:
        out_padded = _build(True)(*args)
    except Exception:
        # Graceful fallback for jax versions where pipeline_mode=pl.Buffered(1) is not
        # supported on this path: identical kernel, default double-buffered weights.
        out_padded = _build(False)(*args)

    return out_padded[:, :, :C] if C_pad != C else out_padded


def reference_mha(x, w_qkv, b_qkv, w_proj, b_proj, n_heads):
    """Plain-JAX reference mirroring the PyTorch forward (eval mode)."""
    B, T, C = x.shape
    hd = C // n_heads
    qkv = x @ w_qkv + b_qkv
    q, k, v = jnp.split(qkv, 3, axis=-1)

    def heads(t):
        return t.reshape(B, T, n_heads, hd).transpose(0, 2, 1, 3)          # (B, H, T, hd)

    q, k, v = heads(q), heads(k), heads(v)
    s = jnp.einsum("bhqd,bhkd->bhqk", q, k) * (1.0 / hd ** 0.5)
    p = jax.nn.softmax(s, axis=-1)
    o = jnp.einsum("bhqk,bhkd->bhqd", p, v)
    o = o.transpose(0, 2, 1, 3).reshape(B, T, C)
    return o @ w_proj + b_proj


if __name__ == "__main__":
    def make_inputs(key, B, T, C):
        kx, k1, k2, k3, k4 = jax.random.split(key, 5)
        x = jax.random.normal(kx, (B, T, C), dtype=jnp.float32)
        # nn.Linear default init U(-1/sqrt(in), 1/sqrt(in)); PyTorch stores W as [out, in]
        bound = 1.0 / (C ** 0.5)
        w_qkv_t = jax.random.uniform(k1, (3 * C, C), minval=-bound, maxval=bound,
                                     dtype=jnp.float32)
        b_qkv = jax.random.uniform(k2, (3 * C,), minval=-bound, maxval=bound,
                                   dtype=jnp.float32)
        w_proj_t = jax.random.uniform(k3, (C, C), minval=-bound, maxval=bound,
                                      dtype=jnp.float32)
        b_proj = jax.random.uniform(k4, (C,), minval=-bound, maxval=bound,
                                    dtype=jnp.float32)
        # pre-transpose to [in, out] so the math is x @ W + b
        return x, w_qkv_t.T, b_qkv, w_proj_t.T, b_proj

    key0, key1 = jax.random.split(jax.random.PRNGKey(0))

    # config from the module: dim=32, n_heads=4, dropout -> identity at inference
    B, T, C, H = 2, 8, 32, 4
    x, w_qkv, b_qkv, w_proj, b_proj = make_inputs(key0, B, T, C)
    out = jax.block_until_ready(
        multi_head_attention(x, w_qkv, b_qkv, w_proj, b_proj, H))
    ref = reference_mha(x, w_qkv, b_qkv, w_proj, b_proj, H)
    assert out.shape == (B, T, C)
    # tolerance slightly relaxed: softmax denominator uses the approximate EUP reciprocal
    assert jnp.allclose(out, ref, atol=2e-3, rtol=2e-3), \
        float(jnp.max(jnp.abs(out - ref)))

    # second config forces 2 q-tiles x 2 kv-tiles per batch: exercises the flash
    # (online-softmax) tiling path end to end
    B2, T2 = 2, 16
    x2, w_qkv2, b_qkv2, w_proj2, b_proj2 = make_inputs(key1, B2, T2, C)
    out2 = jax.block_until_ready(
        multi_head_attention(x2, w_qkv2, b_qkv2, w_proj2, b_proj2, H,
                             q_tile=8, kv_tile=8))
    ref2 = reference_mha(x2, w_qkv2, b_qkv2, w_proj2, b_proj2, H)
    assert out2.shape == (B2, T2, C)
    assert jnp.allclose(out2, ref2, atol=2e-3, rtol=2e-3), \
        float(jnp.max(jnp.abs(out2 - ref2)))

    print("KERNEL_OK")
</pallas_src>

<mosaic_0001>
module attributes {stable_mosaic.version = 11 : i64} {
  func.func @mha_flash_kernel(%arg0: i32, %arg1: i32, %arg2: i32, %arg3: memref<1x8x32xf32, #tpu.memory_space<vmem>>, %arg4: memref<1x8x32xf32, #tpu.memory_space<vmem>>, %arg5: memref<32x32xf32, #tpu.memory_space<vmem>>, %arg6: memref<1x32xf32, #tpu.memory_space<vmem>>, %arg7: memref<32x64xf32, #tpu.memory_space<vmem>>, %arg8: memref<1x64xf32, #tpu.memory_space<vmem>>, %arg9: memref<32x128xf32, #tpu.memory_space<vmem>>, %arg10: memref<1x128xf32, #tpu.memory_space<vmem>>, %arg11: memref<1x8x128xf32, #tpu.memory_space<vmem>>, %arg12: memref<8x32xf32, #tpu.memory_space<vmem>>, %arg13: memref<4x8x1xf32, #tpu.memory_space<vmem>>, %arg14: memref<4x8x1xf32, #tpu.memory_space<vmem>>, %arg15: memref<8x32xf32, #tpu.memory_space<vmem>>) attributes {dimension_semantics = [#tpu.dimension_semantics<parallel>, #tpu.dimension_semantics<parallel>, #tpu.dimension_semantics<arbitrary>], iteration_bounds = array<i64: 2, 1, 1>, scalar_prefetch = 0 : i64, scratch_operands = 4 : i64, tpu.core_type = #tpu.core_type<tc>, window_params = [{transform_indices = @transform_0, window_bounds = array<i64: 1, 8, 32>}, {transform_indices = @transform_1, window_bounds = array<i64: 1, 8, 32>}, {pipeline_mode = #tpu.pipeline_mode<synchronous>, transform_indices = @transform_2, window_bounds = array<i64: 32, 32>}, {pipeline_mode = #tpu.pipeline_mode<synchronous>, transform_indices = @transform_3, window_bounds = array<i64: 1, 32>}, {pipeline_mode = #tpu.pipeline_mode<synchronous>, transform_indices = @transform_4, window_bounds = array<i64: 32, 64>}, {pipeline_mode = #tpu.pipeline_mode<synchronous>, transform_indices = @transform_5, window_bounds = array<i64: 1, 64>}, {pipeline_mode = #tpu.pipeline_mode<synchronous>, transform_indices = @transform_6, window_bounds = array<i64: 32, 128>}, {pipeline_mode = #tpu.pipeline_mode<synchronous>, transform_indices = @transform_7, window_bounds = array<i64: 1, 128>}, {transform_indices = @transform_8, window_bounds = array<i64: 1, 8, 128>}]} {
    %c0_i32 = arith.constant 0 : i32
    %0 = arith.cmpi eq, %arg2, %c0_i32 : i32
    %1 = arith.extui %0 : i1 to i32
    %c0_i32_0 = arith.constant 0 : i32
    %2 = arith.cmpi ne, %1, %c0_i32_0 : i32
    scf.if %2 {
      %c0_91 = arith.constant 0 : index
      %c0_92 = arith.constant 0 : index
      %c0_93 = arith.constant 0 : index
      %141 = vector.load %arg3[%c0_91, %c0_92, %c0_93] : memref<1x8x32xf32, #tpu.memory_space<vmem>>, vector<1x8x32xf32>
      %142 = vector.shape_cast %141 : vector<1x8x32xf32> to vector<8x32xf32>
      %c0_94 = arith.constant 0 : index
      %c0_95 = arith.constant 0 : index
      %143 = vector.load %arg5[%c0_94, %c0_95] : memref<32x32xf32, #tpu.memory_space<vmem>>, vector<32x32xf32>
      %cst_96 = arith.constant dense<0.000000e+00> : vector<8x32xf32>
      %144 = tpu.matmul %142, %143, %cst_96 {dimension_numbers = #tpu.dot_dimension_numbers<[1], [0], [0], [1], [0, 0, 1, 1], [], []>} : vector<8x32xf32>, vector<32x32xf32>, vector<8x32xf32> -> vector<8x32xf32>
      %c0_97 = arith.constant 0 : index
      %c0_98 = arith.constant 0 : index
      %145 = vector.load %arg6[%c0_97, %c0_98] : memref<1x32xf32, #tpu.memory_space<vmem>>, vector<1x32xf32>
      %146 = vector.broadcast %145 : vector<1x32xf32> to vector<8x32xf32>
      %147 = arith.addf %144, %146 : vector<8x32xf32>
      %c0_99 = arith.constant 0 : index
      %c0_100 = arith.constant 0 : index
      %148 = vector.load %arg12[%c0_99, %c0_100] : memref<8x32xf32, #tpu.memory_space<vmem>>, vector<8x32xf32>
      tpu.vector_store %arg12[%c0_99, %c0_100], %147 {strides = array<i32>} : memref<8x32xf32, #tpu.memory_space<vmem>>, vector<8x32xf32>,
      %cst_101 = arith.constant 0xFF800000 : f32
      %149 = vector.broadcast %cst_101 : f32 to vector<4x8x1xf32>
      %c0_102 = arith.constant 0 : index
      %c0_103 = arith.constant 0 : index
      %c0_104 = arith.constant 0 : index
      %150 = vector.load %arg13[%c0_102, %c0_103, %c0_104] : memref<4x8x1xf32, #tpu.memory_space<vmem>>, vector<4x8x1xf32>
      tpu.vector_store %arg13[%c0_102, %c0_103, %c0_104], %149 {strides = array<i32>} : memref<4x8x1xf32, #tpu.memory_space<vmem>>, vector<4x8x1xf32>,
      %cst_105 = arith.constant 0.000000e+00 : f32
      %151 = vector.broadcast %cst_105 : f32 to vector<4x8x1xf32>
      %c0_106 = arith.constant 0 : index
      %c0_107 = arith.constant 0 : index
      %c0_108 = arith.constant 0 : index
      %152 = vector.load %arg14[%c0_106, %c0_107, %c0_108] : memref<4x8x1xf32, #tpu.memory_space<vmem>>, vector<4x8x1xf32>
      tpu.vector_store %arg14[%c0_106, %c0_107, %c0_108], %151 {strides = array<i32>} : memref<4x8x1xf32, #tpu.memory_space<vmem>>, vector<4x8x1xf32>,
      %cst_109 = arith.constant 0.000000e+00 : f32
      %153 = vector.broadcast %cst_109 : f32 to vector<8x32xf32>
      %c0_110 = arith.constant 0 : index
      %c0_111 = arith.constant 0 : index
      %154 = vector.load %arg15[%c0_110, %c0_111] : memref<8x32xf32, #tpu.memory_space<vmem>>, vector<8x32xf32>
      tpu.vector_store %arg15[%c0_110, %c0_111], %153 {strides = array<i32>} : memref<8x32xf32, #tpu.memory_space<vmem>>, vector<8x32xf32>,
    } else {
    }
    %c0 = arith.constant 0 : index
    %c0_1 = arith.constant 0 : index
    %c0_2 = arith.constant 0 : index
    %3 = vector.load %arg4[%c0, %c0_1, %c0_2] : memref<1x8x32xf32, #tpu.memory_space<vmem>>, vector<1x8x32xf32>
    %4 = vector.shape_cast %3 : vector<1x8x32xf32> to vector<8x32xf32>
    %c0_3 = arith.constant 0 : index
    %c0_4 = arith.constant 0 : index
    %5 = vector.load %arg7[%c0_3, %c0_4] : memref<32x64xf32, #tpu.memory_space<vmem>>, vector<32x64xf32>
    %cst = arith.constant dense<0.000000e+00> : vector<8x64xf32>
    %6 = tpu.matmul %4, %5, %cst {dimension_numbers = #tpu.dot_dimension_numbers<[1], [0], [0], [1], [0, 0, 1, 1], [], []>} : vector<8x32xf32>, vector<32x64xf32>, vector<8x64xf32> -> vector<8x64xf32>
    %c0_5 = arith.constant 0 : index
    %c0_6 = arith.constant 0 : index
    %7 = vector.load %arg8[%c0_5, %c0_6] : memref<1x64xf32, #tpu.memory_space<vmem>>, vector<1x64xf32>
    %8 = vector.broadcast %7 : vector<1x64xf32> to vector<8x64xf32>
    %9 = arith.addf %6, %8 : vector<8x64xf32>
    %c0_7 = arith.constant 0 : index
    %c0_8 = arith.constant 0 : index
    %10 = vector.load %arg12[%c0_7, %c0_8] : memref<8x32xf32, #tpu.memory_space<vmem>>, vector<8x8xf32>
    %11 = vector.extract_strided_slice %9 {offsets = [0, 0], sizes = [8, 8], strides = [1, 1]} : vector<8x64xf32> to vector<8x8xf32>
    %12 = vector.extract_strided_slice %9 {offsets = [0, 32], sizes = [8, 8], strides = [1, 1]} : vector<8x64xf32> to vector<8x8xf32>
    "tpu.trace_start"() <{level = 10 : i32, message = "qd,kd->qk"}> : () -> ()
    %cst_9 = arith.constant dense<0.000000e+00> : vector<8x8xf32>
    %13 = tpu.matmul %10, %11, %cst_9 {dimension_numbers = #tpu.dot_dimension_numbers<[1], [1], [0], [0], [0, 0, 1, 0], [], []>} : vector<8x8xf32>, vector<8x8xf32>, vector<8x8xf32> -> vector<8x8xf32>
    "tpu.trace_stop"() : () -> ()
    %c0_10 = arith.constant 0 : index
    %c0_11 = arith.constant 0 : index
    %c0_12 = arith.constant 0 : index
    %14 = vector.load %arg13[%c0_10, %c0_11, %c0_12] : memref<4x8x1xf32, #tpu.memory_space<vmem>>, vector<1x8x1xf32>
    %15 = vector.shape_cast %14 : vector<1x8x1xf32> to vector<8x1xf32>
    %cst_13 = arith.constant dense<0xFF800000> : vector<8xf32>
    %16 = vector.multi_reduction <maximumf>, %13, %cst_13 [1] : vector<8x8xf32> to vector<8xf32>
    %17 = vector.shape_cast %16 : vector<8xf32> to vector<8x1xf32>
    %18 = arith.maximumf %15, %17 : vector<8x1xf32>
    %19 = arith.subf %15, %18 : vector<8x1xf32>
    %20 = math.exp %19 : vector<8x1xf32>
    %21 = vector.broadcast %18 : vector<8x1xf32> to vector<8x8xf32>
    %22 = arith.subf %13, %21 : vector<8x8xf32>
    %23 = math.exp %22 : vector<8x8xf32>
    %c0_14 = arith.constant 0 : index
    %c0_15 = arith.constant 0 : index
    %c0_16 = arith.constant 0 : index
    %24 = vector.load %arg14[%c0_14, %c0_15, %c0_16] : memref<4x8x1xf32, #tpu.memory_space<vmem>>, vector<1x8x1xf32>
    %25 = vector.shape_cast %24 : vector<1x8x1xf32> to vector<8x1xf32>
    %26 = arith.mulf %20, %25 : vector<8x1xf32>
    %cst_17 = arith.constant dense<0.000000e+00> : vector<8xf32>
    %27 = vector.multi_reduction <add>, %23, %cst_17 [1] : vector<8x8xf32> to vector<8xf32>
    %28 = vector.shape_cast %27 : vector<8xf32> to vector<8x1xf32>
    %29 = arith.addf %26, %28 : vector<8x1xf32>
    %c0_18 = arith.constant 0 : index
    %c0_19 = arith.constant 0 : index
    %c0_20 = arith.constant 0 : index
    %30 = vector.load %arg14[%c0_18, %c0_19, %c0_20] : memref<4x8x1xf32, #tpu.memory_space<vmem>>, vector<1x8x1xf32>
    %31 = vector.shape_cast %30 : vector<1x8x1xf32> to vector<8x1xf32>
    %32 = vector.shape_cast %29 : vector<8x1xf32> to vector<1x8x1xf32>
    tpu.vector_store %arg14[%c0_18, %c0_19, %c0_20], %32 {strides = array<i32>} : memref<4x8x1xf32, #tpu.memory_space<vmem>>, vector<1x8x1xf32>,
    %cst_21 = arith.constant dense<0.000000e+00> : vector<8x8xf32>
    %33 = tpu.matmul %23, %12, %cst_21 {dimension_numbers = #tpu.dot_dimension_numbers<[1], [0], [0], [1], [0, 0, 1, 1], [], []>} : vector<8x8xf32>, vector<8x8xf32>, vector<8x8xf32> -> vector<8x8xf32>
    %c0_22 = arith.constant 0 : index
    %c0_23 = arith.constant 0 : index
    %34 = vector.load %arg15[%c0_22, %c0_23] : memref<8x32xf32, #tpu.memory_space<vmem>>, vector<8x8xf32>
    %35 = vector.broadcast %20 : vector<8x1xf32> to vector<8x8xf32>
    %36 = arith.mulf %35, %34 : vector<8x8xf32>
    %37 = arith.addf %36, %33 : vector<8x8xf32>
    %c0_24 = arith.constant 0 : index
    %c0_25 = arith.constant 0 : index
    %38 = vector.load %arg15[%c0_24, %c0_25] : memref<8x32xf32, #tpu.memory_space<vmem>>, vector<8x8xf32>
    tpu.vector_store %arg15[%c0_24, %c0_25], %37 {strides = array<i32>} : memref<8x32xf32, #tpu.memory_space<vmem>>, vector<8x8xf32>,
    %c0_26 = arith.constant 0 : index
    %c0_27 = arith.constant 0 : index
    %c0_28 = arith.constant 0 : index
    %39 = vector.load %arg13[%c0_26, %c0_27, %c0_28] : memref<4x8x1xf32, #tpu.memory_space<vmem>>, vector<1x8x1xf32>
    %40 = vector.shape_cast %39 : vector<1x8x1xf32> to vector<8x1xf32>
    %41 = vector.shape_cast %18 : vector<8x1xf32> to vector<1x8x1xf32>
    tpu.vector_store %arg13[%c0_26, %c0_27, %c0_28], %41 {strides = array<i32>} : memref<4x8x1xf32, #tpu.memory_space<vmem>>, vector<1x8x1xf32>,
    %c0_29 = arith.constant 0 : index
    %c8 = arith.constant 8 : index
    %42 = vector.load %arg12[%c0_29, %c8] : memref<8x32xf32, #tpu.memory_space<vmem>>, vector<8x8xf32>
    %43 = vector.extract_strided_slice %9 {offsets = [0, 8], sizes = [8, 8], strides = [1, 1]} : vector<8x64xf32> to vector<8x8xf32>
    %44 = vector.extract_strided_slice %9 {offsets = [0, 40], sizes = [8, 8], strides = [1, 1]} : vector<8x64xf32> to vector<8x8xf32>
    "tpu.trace_start"() <{level = 10 : i32, message = "qd,kd->qk"}> : () -> ()
    %cst_30 = arith.constant dense<0.000000e+00> : vector<8x8xf32>
    %45 = tpu.matmul %42, %43, %cst_30 {dimension_numbers = #tpu.dot_dimension_numbers<[1], [1], [0], [0], [0, 0, 1, 0], [], []>} : vector<8x8xf32>, vector<8x8xf32>, vector<8x8xf32> -> vector<8x8xf32>
    "tpu.trace_stop"() : () -> ()
    %c1 = arith.constant 1 : index
    %c0_31 = arith.constant 0 : index
    %c0_32 = arith.constant 0 : index
    %46 = vector.load %arg13[%c1, %c0_31, %c0_32] : memref<4x8x1xf32, #tpu.memory_space<vmem>>, vector<1x8x1xf32>
    %47 = vector.shape_cast %46 : vector<1x8x1xf32> to vector<8x1xf32>
    %cst_33 = arith.constant dense<0xFF800000> : vector<8xf32>
    %48 = vector.multi_reduction <maximumf>, %45, %cst_33 [1] : vector<8x8xf32> to vector<8xf32>
    %49 = vector.shape_cast %48 : vector<8xf32> to vector<8x1xf32>
    %50 = arith.maximumf %47, %49 : vector<8x1xf32>
    %51 = arith.subf %47, %50 : vector<8x1xf32>
    %52 = math.exp %51 : vector<8x1xf32>
    %53 = vector.broadcast %50 : vector<8x1xf32> to vector<8x8xf32>
    %54 = arith.subf %45, %53 : vector<8x8xf32>
    %55 = math.exp %54 : vector<8x8xf32>
    %c1_34 = arith.constant 1 : index
    %c0_35 = arith.constant 0 : index
    %c0_36 = arith.constant 0 : index
    %56 = vector.load %arg14[%c1_34, %c0_35, %c0_36] : memref<4x8x1xf32, #tpu.memory_space<vmem>>, vector<1x8x1xf32>
    %57 = vector.shape_cast %56 : vector<1x8x1xf32> to vector<8x1xf32>
    %58 = arith.mulf %52, %57 : vector<8x1xf32>
    %cst_37 = arith.constant dense<0.000000e+00> : vector<8xf32>
    %59 = vector.multi_reduction <add>, %55, %cst_37 [1] : vector<8x8xf32> to vector<8xf32>
    %60 = vector.shape_cast %59 : vector<8xf32> to vector<8x1xf32>
    %61 = arith.addf %58, %60 : vector<8x1xf32>
    %c1_38 = arith.constant 1 : index
    %c0_39 = arith.constant 0 : index
    %c0_40 = arith.constant 0 : index
    %62 = vector.load %arg14[%c1_38, %c0_39, %c0_40] : memref<4x8x1xf32, #tpu.memory_space<vmem>>, vector<1x8x1xf32>
    %63 = vector.shape_cast %62 : vector<1x8x1xf32> to vector<8x1xf32>
    %64 = vector.shape_cast %61 : vector<8x1xf32> to vector<1x8x1xf32>
    tpu.vector_store %arg14[%c1_38, %c0_39, %c0_40], %64 {strides = array<i32>} : memref<4x8x1xf32, #tpu.memory_space<vmem>>, vector<1x8x1xf32>,
    %cst_41 = arith.constant dense<0.000000e+00> : vector<8x8xf32>
    %65 = tpu.matmul %55, %44, %cst_41 {dimension_numbers = #tpu.dot_dimension_numbers<[1], [0], [0], [1], [0, 0, 1, 1], [], []>} : vector<8x8xf32>, vector<8x8xf32>, vector<8x8xf32> -> vector<8x8xf32>
    %c0_42 = arith.constant 0 : index
    %c8_43 = arith.constant 8 : index
    %66 = vector.load %arg15[%c0_42, %c8_43] : memref<8x32xf32, #tpu.memory_space<vmem>>, vector<8x8xf32>
    %67 = vector.broadcast %52 : vector<8x1xf32> to vector<8x8xf32>
    %68 = arith.mulf %67, %66 : vector<8x8xf32>
    %69 = arith.addf %68, %65 : vector<8x8xf32>
    %c0_44 = arith.constant 0 : index
    %c8_45 = arith.constant 8 : index
    %70 = vector.load %arg15[%c0_44, %c8_45] : memref<8x32xf32, #tpu.memory_space<vmem>>, vector<8x8xf32>
    tpu.vector_store %arg15[%c0_44, %c8_45], %69 {strides = array<i32>} : memref<8x32xf32, #tpu.memory_space<vmem>>, vector<8x8xf32>,
    %c1_46 = arith.constant 1 : index
    %c0_47 = arith.constant 0 : index
    %c0_48 = arith.constant 0 : index
    %71 = vector.load %arg13[%c1_46, %c0_47, %c0_48] : memref<4x8x1xf32, #tpu.memory_space<vmem>>, vector<1x8x1xf32>
    %72 = vector.shape_cast %71 : vector<1x8x1xf32> to vector<8x1xf32>
    %73 = vector.shape_cast %50 : vector<8x1xf32> to vector<1x8x1xf32>
    tpu.vector_store %arg13[%c1_46, %c0_47, %c0_48], %73 {strides = array<i32>} : memref<4x8x1xf32, #tpu.memory_space<vmem>>, vector<1x8x1xf32>,
    %c0_49 = arith.constant 0 : index
    %c16 = arith.constant 16 : index
    %74 = vector.load %arg12[%c0_49, %c16] : memref<8x32xf32, #tpu.memory_space<vmem>>, vector<8x8xf32>
    %75 = vector.extract_strided_slice %9 {offsets = [0, 16], sizes = [8, 8], strides = [1, 1]} : vector<8x64xf32> to vector<8x8xf32>
    %76 = vector.extract_strided_slice %9 {offsets = [0, 48], sizes = [8, 8], strides = [1, 1]} : vector<8x64xf32> to vector<8x8xf32>
    "tpu.trace_start"() <{level = 10 : i32, message = "qd,kd->qk"}> : () -> ()
    %cst_50 = arith.constant dense<0.000000e+00> : vector<8x8xf32>
    %77 = tpu.matmul %74, %75, %cst_50 {dimension_numbers = #tpu.dot_dimension_numbers<[1], [1], [0], [0], [0, 0, 1, 0], [], []>} : vector<8x8xf32>, vector<8x8xf32>, vector<8x8xf32> -> vector<8x8xf32>
    "tpu.trace_stop"() : () -> ()
    %c2 = arith.constant 2 : index
    %c0_51 = arith.constant 0 : index
    %c0_52 = arith.constant 0 : index
    %78 = vector.load %arg13[%c2, %c0_51, %c0_52] : memref<4x8x1xf32, #tpu.memory_space<vmem>>, vector<1x8x1xf32>
    %79 = vector.shape_cast %78 : vector<1x8x1xf32> to vector<8x1xf32>
    %cst_53 = arith.constant dense<0xFF800000> : vector<8xf32>
    %80 = vector.multi_reduction <maximumf>, %77, %cst_53 [1] : vector<8x8xf32> to vector<8xf32>
    %81 = vector.shape_cast %80 : vector<8xf32> to vector<8x1xf32>
    %82 = arith.maximumf %79, %81 : vector<8x1xf32>
    %83 = arith.subf %79, %82 : vector<8x1xf32>
    %84 = math.exp %83 : vector<8x1xf32>
    %85 = vector.broadcast %82 : vector<8x1xf32> to vector<8x8xf32>
    %86 = arith.subf %77, %85 : vector<8x8xf32>
    %87 = math.exp %86 : vector<8x8xf32>
    %c2_54 = arith.constant 2 : index
    %c0_55 = arith.constant 0 : index
    %c0_56 = arith.constant 0 : index
    %88 = vector.load %arg14[%c2_54, %c0_55, %c0_56] : memref<4x8x1xf32, #tpu.memory_space<vmem>>, vector<1x8x1xf32>
    %89 = vector.shape_cast %88 : vector<1x8x1xf32> to vector<8x1xf32>
    %90 = arith.mulf %84, %89 : vector<8x1xf32>
    %cst_57 = arith.constant dense<0.000000e+00> : vector<8xf32>
    %91 = vector.multi_reduction <add>, %87, %cst_57 [1] : vector<8x8xf32> to vector<8xf32>
    %92 = vector.shape_cast %91 : vector<8xf32> to vector<8x1xf32>
    %93 = arith.addf %90, %92 : vector<8x1xf32>
    %c2_58 = arith.constant 2 : index
    %c0_59 = arith.constant 0 : index
    %c0_60 = arith.constant 0 : index
    %94 = vector.load %arg14[%c2_58, %c0_59, %c0_60] : memref<4x8x1xf32, #tpu.memory_space<vmem>>, vector<1x8x1xf32>
    %95 = vector.shape_cast %94 : vector<1x8x1xf32> to vector<8x1xf32>
    %96 = vector.shape_cast %93 : vector<8x1xf32> to vector<1x8x1xf32>
    tpu.vector_store %arg14[%c2_58, %c0_59, %c0_60], %96 {strides = array<i32>} : memref<4x8x1xf32, #tpu.memory_space<vmem>>, vector<1x8x1xf32>,
    %cst_61 = arith.constant dense<0.000000e+00> : vector<8x8xf32>
    %97 = tpu.matmul %87, %76, %cst_61 {dimension_numbers = #tpu.dot_dimension_numbers<[1], [0], [0], [1], [0, 0, 1, 1], [], []>} : vector<8x8xf32>, vector<8x8xf32>, vector<8x8xf32> -> vector<8x8xf32>
    %c0_62 = arith.constant 0 : index
    %c16_63 = arith.constant 16 : index
    %98 = vector.load %arg15[%c0_62, %c16_63] : memref<8x32xf32, #tpu.memory_space<vmem>>, vector<8x8xf32>
    %99 = vector.broadcast %84 : vector<8x1xf32> to vector<8x8xf32>
    %100 = arith.mulf %99, %98 : vector<8x8xf32>
    %101 = arith.addf %100, %97 : vector<8x8xf32>
    %c0_64 = arith.constant 0 : index
    %c16_65 = arith.constant 16 : index
    %102 = vector.load %arg15[%c0_64, %c16_65] : memref<8x32xf32, #tpu.memory_space<vmem>>, vector<8x8xf32>
    tpu.vector_store %arg15[%c0_64, %c16_65], %101 {strides = array<i32>} : memref<8x32xf32, #tpu.memory_space<vmem>>, vector<8x8xf32>,
    %c2_66 = arith.constant 2 : index
    %c0_67 = arith.constant 0 : index
    %c0_68 = arith.constant 0 : index
    %103 = vector.load %arg13[%c2_66, %c0_67, %c0_68] : memref<4x8x1xf32, #tpu.memory_space<vmem>>, vector<1x8x1xf32>
    %104 = vector.shape_cast %103 : vector<1x8x1xf32> to vector<8x1xf32>
    %105 = vector.shape_cast %82 : vector<8x1xf32> to vector<1x8x1xf32>
    tpu.vector_store %arg13[%c2_66, %c0_67, %c0_68], %105 {strides = array<i32>} : memref<4x8x1xf32, #tpu.memory_space<vmem>>, vector<1x8x1xf32>,
    %c0_69 = arith.constant 0 : index
    %c24 = arith.constant 24 : index
    %106 = vector.load %arg12[%c0_69, %c24] : memref<8x32xf32, #tpu.memory_space<vmem>>, vector<8x8xf32>
    %107 = vector.extract_strided_slice %9 {offsets = [0, 24], sizes = [8, 8], strides = [1, 1]} : vector<8x64xf32> to vector<8x8xf32>
    %108 = vector.extract_strided_slice %9 {offsets = [0, 56], sizes = [8, 8], strides = [1, 1]} : vector<8x64xf32> to vector<8x8xf32>
    "tpu.trace_start"() <{level = 10 : i32, message = "qd,kd->qk"}> : () -> ()
    %cst_70 = arith.constant dense<0.000000e+00> : vector<8x8xf32>
    %109 = tpu.matmul %106, %107, %cst_70 {dimension_numbers = #tpu.dot_dimension_numbers<[1], [1], [0], [0], [0, 0, 1, 0], [], []>} : vector<8x8xf32>, vector<8x8xf32>, vector<8x8xf32> -> vector<8x8xf32>
    "tpu.trace_stop"() : () -> ()
    %c3 = arith.constant 3 : index
    %c0_71 = arith.constant 0 : index
    %c0_72 = arith.constant 0 : index
    %110 = vector.load %arg13[%c3, %c0_71, %c0_72] : memref<4x8x1xf32, #tpu.memory_space<vmem>>, vector<1x8x1xf32>
    %111 = vector.shape_cast %110 : vector<1x8x1xf32> to vector<8x1xf32>
    %cst_73 = arith.constant dense<0xFF800000> : vector<8xf32>
    %112 = vector.multi_reduction <maximumf>, %109, %cst_73 [1] : vector<8x8xf32> to vector<8xf32>
    %113 = vector.shape_cast %112 : vector<8xf32> to vector<8x1xf32>
    %114 = arith.maximumf %111, %113 : vector<8x1xf32>
    %115 = arith.subf %111, %114 : vector<8x1xf32>
    %116 = math.exp %115 : vector<8x1xf32>
    %117 = vector.broadcast %114 : vector<8x1xf32> to vector<8x8xf32>
    %118 = arith.subf %109, %117 : vector<8x8xf32>
    %119 = math.exp %118 : vector<8x8xf32>
    %c3_74 = arith.constant 3 : index
    %c0_75 = arith.constant 0 : index
    %c0_76 = arith.constant 0 : index
    %120 = vector.load %arg14[%c3_74, %c0_75, %c0_76] : memref<4x8x1xf32, #tpu.memory_space<vmem>>, vector<1x8x1xf32>
    %121 = vector.shape_cast %120 : vector<1x8x1xf32> to vector<8x1xf32>
    %122 = arith.mulf %116, %121 : vector<8x1xf32>
    %cst_77 = arith.constant dense<0.000000e+00> : vector<8xf32>
    %123 = vector.multi_reduction <add>, %119, %cst_77 [1] : vector<8x8xf32> to vector<8xf32>
    %124 = vector.shape_cast %123 : vector<8xf32> to vector<8x1xf32>
    %125 = arith.addf %122, %124 : vector<8x1xf32>
    %c3_78 = arith.constant 3 : index
    %c0_79 = arith.constant 0 : index
    %c0_80 = arith.constant 0 : index
    %126 = vector.load %arg14[%c3_78, %c0_79, %c0_80] : memref<4x8x1xf32, #tpu.memory_space<vmem>>, vector<1x8x1xf32>
    %127 = vector.shape_cast %126 : vector<1x8x1xf32> to vector<8x1xf32>
    %128 = vector.shape_cast %125 : vector<8x1xf32> to vector<1x8x1xf32>
    tpu.vector_store %arg14[%c3_78, %c0_79, %c0_80], %128 {strides = array<i32>} : memref<4x8x1xf32, #tpu.memory_space<vmem>>, vector<1x8x1xf32>,
    %cst_81 = arith.constant dense<0.000000e+00> : vector<8x8xf32>
    %129 = tpu.matmul %119, %108, %cst_81 {dimension_numbers = #tpu.dot_dimension_numbers<[1], [0], [0], [1], [0, 0, 1, 1], [], []>} : vector<8x8xf32>, vector<8x8xf32>, vector<8x8xf32> -> vector<8x8xf32>
    %c0_82 = arith.constant 0 : index
    %c24_83 = arith.constant 24 : index
    %130 = vector.load %arg15[%c0_82, %c24_83] : memref<8x32xf32, #tpu.memory_space<vmem>>, vector<8x8xf32>
    %131 = vector.broadcast %116 : vector<8x1xf32> to vector<8x8xf32>
    %132 = arith.mulf %131, %130 : vector<8x8xf32>
    %133 = arith.addf %132, %129 : vector<8x8xf32>
    %c0_84 = arith.constant 0 : index
    %c24_85 = arith.constant 24 : index
    %134 = vector.load %arg15[%c0_84, %c24_85] : memref<8x32xf32, #tpu.memory_space<vmem>>, vector<8x8xf32>
    tpu.vector_store %arg15[%c0_84, %c24_85], %133 {strides = array<i32>} : memref<8x32xf32, #tpu.memory_space<vmem>>, vector<8x8xf32>,
    %c3_86 = arith.constant 3 : index
    %c0_87 = arith.constant 0 : index
    %c0_88 = arith.constant 0 : index
    %135 = vector.load %arg13[%c3_86, %c0_87, %c0_88] : memref<4x8x1xf32, #tpu.memory_space<vmem>>, vector<1x8x1xf32>
    %136 = vector.shape_cast %135 : vector<1x8x1xf32> to vector<8x1xf32>
    %137 = vector.shape_cast %114 : vector<8x1xf32> to vector<1x8x1xf32>
    tpu.vector_store %arg13[%c3_86, %c0_87, %c0_88], %137 {strides = array<i32>} : memref<4x8x1xf32, #tpu.memory_space<vmem>>, vector<1x8x1xf32>,
    %c0_i32_89 = arith.constant 0 : i32
    %138 = arith.cmpi eq, %arg2, %c0_i32_89 : i32
    %139 = arith.extui %138 : i1 to i32
    %c0_i32_90 = arith.constant 0 : i32
    %140 = arith.cmpi ne, %139, %c0_i32_90 : i32
    scf.if %140 {
      %c0_91 = arith.constant 0 : index
      %c0_92 = arith.constant 0 : index
      %c0_93 = arith.constant 0 : index
      %141 = vector.load %arg14[%c0_91, %c0_92, %c0_93] : memref<4x8x1xf32, #tpu.memory_space<vmem>>, vector<1x8x1xf32>
      %142 = vector.shape_cast %141 : vector<1x8x1xf32> to vector<8x1xf32>
      %143 = tpu.reciprocal %142 {approx = true} : vector<8x1xf32> -> vector<8x1xf32>
      %c0_94 = arith.constant 0 : index
      %c0_95 = arith.constant 0 : index
      %144 = vector.load %arg15[%c0_94, %c0_95] : memref<8x32xf32, #tpu.memory_space<vmem>>, vector<8x8xf32>
      %145 = vector.broadcast %143 : vector<8x1xf32> to vector<8x8xf32>
      %146 = arith.mulf %144, %145 : vector<8x8xf32>
      %c0_96 = arith.constant 0 : index
      %c0_97 = arith.constant 0 : index
      %147 = vector.load %arg15[%c0_96, %c0_97] : memref<8x32xf32, #tpu.memory_space<vmem>>, vector<8x8xf32>
      tpu.vector_store %arg15[%c0_96, %c0_97], %146 {strides = array<i32>} : memref<8x32xf32, #tpu.memory_space<vmem>>, vector<8x8xf32>,
      %c1_98 = arith.constant 1 : index
      %c0_99 = arith.constant 0 : index
      %c0_100 = arith.constant 0 : index
      %148 = vector.load %arg14[%c1_98, %c0_99, %c0_100] : memref<4x8x1xf32, #tpu.memory_space<vmem>>, vector<1x8x1xf32>
      %149 = vector.shape_cast %148 : vector<1x8x1xf32> to vector<8x1xf32>
      %150 = tpu.reciprocal %149 {approx = true} : vector<8x1xf32> -> vector<8x1xf32>
      %c0_101 = arith.constant 0 : index
      %c8_102 = arith.constant 8 : index
      %151 = vector.load %arg15[%c0_101, %c8_102] : memref<8x32xf32, #tpu.memory_space<vmem>>, vector<8x8xf32>
      %152 = vector.broadcast %150 : vector<8x1xf32> to vector<8x8xf32>
      %153 = arith.mulf %151, %152 : vector<8x8xf32>
      %c0_103 = arith.constant 0 : index
      %c8_104 = arith.constant 8 : index
      %154 = vector.load %arg15[%c0_103, %c8_104] : memref<8x32xf32, #tpu.memory_space<vmem>>, vector<8x8xf32>
      tpu.vector_store %arg15[%c0_103, %c8_104], %153 {strides = array<i32>} : memref<8x32xf32, #tpu.memory_space<vmem>>, vector<8x8xf32>,
      %c2_105 = arith.constant 2 : index
      %c0_106 = arith.constant 0 : index
      %c0_107 = arith.constant 0 : index
      %155 = vector.load %arg14[%c2_105, %c0_106, %c0_107] : memref<4x8x1xf32, #tpu.memory_space<vmem>>, vector<1x8x1xf32>
      %156 = vector.shape_cast %155 : vector<1x8x1xf32> to vector<8x1xf32>
      %157 = tpu.reciprocal %156 {approx = true} : vector<8x1xf32> -> vector<8x1xf32>
      %c0_108 = arith.constant 0 : index
      %c16_109 = arith.constant 16 : index
      %158 = vector.load %arg15[%c0_108, %c16_109] : memref<8x32xf32, #tpu.memory_space<vmem>>, vector<8x8xf32>
      %159 = vector.broadcast %157 : vector<8x1xf32> to vector<8x8xf32>
      %160 = arith.mulf %158, %159 : vector<8x8xf32>
      %c0_110 = arith.constant 0 : index
      %c16_111 = arith.constant 16 : index
      %161 = vector.load %arg15[%c0_110, %c16_111] : memref<8x32xf32, #tpu.memory_space<vmem>>, vector<8x8xf32>
      tpu.vector_store %arg15[%c0_110, %c16_111], %160 {strides = array<i32>} : memref<8x32xf32, #tpu.memory_space<vmem>>, vector<8x8xf32>,
      %c3_112 = arith.constant 3 : index
      %c0_113 = arith.constant 0 : index
      %c0_114 = arith.constant 0 : index
      %162 = vector.load %arg14[%c3_112, %c0_113, %c0_114] : memref<4x8x1xf32, #tpu.memory_space<vmem>>, vector<1x8x1xf32>
      %163 = vector.shape_cast %162 : vector<1x8x1xf32> to vector<8x1xf32>
      %164 = tpu.reciprocal %163 {approx = true} : vector<8x1xf32> -> vector<8x1xf32>
      %c0_115 = arith.constant 0 : index
      %c24_116 = arith.constant 24 : index
      %165 = vector.load %arg15[%c0_115, %c24_116] : memref<8x32xf32, #tpu.memory_space<vmem>>, vector<8x8xf32>
      %166 = vector.broadcast %164 : vector<8x1xf32> to vector<8x8xf32>
      %167 = arith.mulf %165, %166 : vector<8x8xf32>
      %c0_117 = arith.constant 0 : index
      %c24_118 = arith.constant 24 : index
      %168 = vector.load %arg15[%c0_117, %c24_118] : memref<8x32xf32, #tpu.memory_space<vmem>>, vector<8x8xf32>
      tpu.vector_store %arg15[%c0_117, %c24_118], %167 {strides = array<i32>} : memref<8x32xf32, #tpu.memory_space<vmem>>, vector<8x8xf32>,
      %c0_119 = arith.constant 0 : index
      %c0_120 = arith.constant 0 : index
      %169 = vector.load %arg15[%c0_119, %c0_120] : memref<8x32xf32, #tpu.memory_space<vmem>>, vector<8x32xf32>
      %c0_121 = arith.constant 0 : index
      %c0_122 = arith.constant 0 : index
      %170 = vector.load %arg9[%c0_121, %c0_122] : memref<32x128xf32, #tpu.memory_space<vmem>>, vector<32x128xf32>
      %cst_123 = arith.constant dense<0.000000e+00> : vector<8x128xf32>
      %171 = tpu.matmul %169, %170, %cst_123 {dimension_numbers = #tpu.dot_dimension_numbers<[1], [0], [0], [1], [0, 0, 1, 1], [], []>} : vector<8x32xf32>, vector<32x128xf32>, vector<8x128xf32> -> vector<8x128xf32>
      %c0_124 = arith.constant 0 : index
      %c0_125 = arith.constant 0 : index
      %172 = vector.load %arg10[%c0_124, %c0_125] : memref<1x128xf32, #tpu.memory_space<vmem>>, vector<1x128xf32>
      %173 = vector.broadcast %172 : vector<1x128xf32> to vector<8x128xf32>
      %174 = arith.addf %171, %173 : vector<8x128xf32>
      %c0_126 = arith.constant 0 : index
      %c0_127 = arith.constant 0 : index
      %c0_128 = arith.constant 0 : index
      %175 = vector.load %arg11[%c0_126, %c0_127, %c0_128] : memref<1x8x128xf32, #tpu.memory_space<vmem>>, vector<1x8x128xf32>
      %176 = vector.shape_cast %175 : vector<1x8x128xf32> to vector<8x128xf32>
      %177 = vector.shape_cast %174 : vector<8x128xf32> to vector<1x8x128xf32>
      tpu.vector_store %arg11[%c0_126, %c0_127, %c0_128], %177 {strides = array<i32>} : memref<1x8x128xf32, #tpu.memory_space<vmem>>, vector<1x8x128xf32>,
    } else {
    }
    return
  }
  func.func @transform_0(%arg0: i32, %arg1: i32, %arg2: i32) -> (i32, i32, i32) {
    %c0_i32 = arith.constant 0 : i32
    %c0_i32_0 = arith.constant 0 : i32
    return %arg0, %arg1, %c0_i32 : i32, i32, i32
  }
  func.func @transform_1(%arg0: i32, %arg1: i32, %arg2: i32) -> (i32, i32, i32) {
    %c0_i32 = arith.constant 0 : i32
    %c0_i32_0 = arith.constant 0 : i32
    return %arg0, %arg2, %c0_i32 : i32, i32, i32
  }
  func.func @transform_2(%arg0: i32, %arg1: i32, %arg2: i32) -> (i32, i32) {
    %c0_i32 = arith.constant 0 : i32
    %c0_i32_0 = arith.constant 0 : i32
    %c0_i32_1 = arith.constant 0 : i32
    return %c0_i32, %c0_i32_0 : i32, i32
  }
  func.func @transform_3(%arg0: i32, %arg1: i32, %arg2: i32) -> (i32, i32) {
    %c0_i32 = arith.constant 0 : i32
    %c0_i32_0 = arith.constant 0 : i32
    %c0_i32_1 = arith.constant 0 : i32
    return %c0_i32, %c0_i32_0 : i32, i32
  }
  func.func @transform_4(%arg0: i32, %arg1: i32, %arg2: i32) -> (i32, i32) {
    %c0_i32 = arith.constant 0 : i32
    %c0_i32_0 = arith.constant 0 : i32
    %c0_i32_1 = arith.constant 0 : i32
    return %c0_i32, %c0_i32_0 : i32, i32
  }
  func.func @transform_5(%arg0: i32, %arg1: i32, %arg2: i32) -> (i32, i32) {
    %c0_i32 = arith.constant 0 : i32
    %c0_i32_0 = arith.constant 0 : i32
    %c0_i32_1 = arith.constant 0 : i32
    return %c0_i32, %c0_i32_0 : i32, i32
  }
  func.func @transform_6(%arg0: i32, %arg1: i32, %arg2: i32) -> (i32, i32) {
    %c0_i32 = arith.constant 0 : i32
    %c0_i32_0 = arith.constant 0 : i32
    %c0_i32_1 = arith.constant 0 : i32
    return %c0_i32, %c0_i32_0 : i32, i32
  }
  func.func @transform_7(%arg0: i32, %arg1: i32, %arg2: i32) -> (i32, i32) {
    %c0_i32 = arith.constant 0 : i32
    %c0_i32_0 = arith.constant 0 : i32
    %c0_i32_1 = arith.constant 0 : i32
    return %c0_i32, %c0_i32_0 : i32, i32
  }
  func.func @transform_8(%arg0: i32, %arg1: i32, %arg2: i32) -> (i32, i32, i32) {
    %c0_i32 = arith.constant 0 : i32
    %c0_i32_0 = arith.constant 0 : i32
    return %arg0, %arg1, %c0_i32 : i32, i32, i32
  }
}

module attributes {stable_mosaic.version = 11 : i64} {
  func.func @mha_flash_kernel(%arg0: i32, %arg1: i32, %arg2: i32, %arg3: memref<1x8x32xf32, #tpu.memory_space<vmem>>, %arg4: memref<1x8x32xf32, #tpu.memory_space<vmem>>, %arg5: memref<32x32xf32, #tpu.memory_space<vmem>>, %arg6: memref<1x32xf32, #tpu.memory_space<vmem>>, %arg7: memref<32x64xf32, #tpu.memory_space<vmem>>, %arg8: memref<1x64xf32, #tpu.memory_space<vmem>>, %arg9: memref<32x128xf32, #tpu.memory_space<vmem>>, %arg10: memref<1x128xf32, #tpu.memory_space<vmem>>, %arg11: memref<1x8x128xf32, #tpu.memory_space<vmem>>, %arg12: memref<8x32xf32, #tpu.memory_space<vmem>>, %arg13: memref<4x8x1xf32, #tpu.memory_space<vmem>>, %arg14: memref<4x8x1xf32, #tpu.memory_space<vmem>>, %arg15: memref<8x32xf32, #tpu.memory_space<vmem>>) attributes {dimension_semantics = [#tpu.dimension_semantics<parallel>, #tpu.dimension_semantics<parallel>, #tpu.dimension_semantics<arbitrary>], iteration_bounds = array<i64: 2, 1, 1>, scalar_prefetch = 0 : i64, scratch_operands = 4 : i64, tpu.core_type = #tpu.core_type<tc>, window_params = [{transform_indices = @transform_0, window_bounds = array<i64: 1, 8, 32>}, {transform_indices = @transform_1, window_bounds = array<i64: 1, 8, 32>}, {pipeline_mode = #tpu.pipeline_mode<synchronous>, transform_indices = @transform_2, window_bounds = array<i64: 32, 32>}, {pipeline_mode = #tpu.pipeline_mode<synchronous>, transform_indices = @transform_3, window_bounds = array<i64: 1, 32>}, {pipeline_mode = #tpu.pipeline_mode<synchronous>, transform_indices = @transform_4, window_bounds = array<i64: 32, 64>}, {pipeline_mode = #tpu.pipeline_mode<synchronous>, transform_indices = @transform_5, window_bounds = array<i64: 1, 64>}, {pipeline_mode = #tpu.pipeline_mode<synchronous>, transform_indices = @transform_6, window_bounds = array<i64: 32, 128>}, {pipeline_mode = #tpu.pipeline_mode<synchronous>, transform_indices = @transform_7, window_bounds = array<i64: 1, 128>}, {transform_indices = @transform_8, window_bounds = array<i64: 1, 8, 128>}]} {
    %c0_i32 = arith.constant 0 : i32
    %0 = arith.cmpi eq, %arg2, %c0_i32 : i32
    %1 = arith.extui %0 : i1 to i32
    %c0_i32_0 = arith.constant 0 : i32
    %2 = arith.cmpi ne, %1, %c0_i32_0 : i32
    scf.if %2 {
      %c0_91 = arith.constant 0 : index
      %c0_92 = arith.constant 0 : index
      %c0_93 = arith.constant 0 : index
      %141 = vector.load %arg3[%c0_91, %c0_92, %c0_93] : memref<1x8x32xf32, #tpu.memory_space<vmem>>, vector<1x8x32xf32>
      %142 = vector.shape_cast %141 : vector<1x8x32xf32> to vector<8x32xf32>
      %c0_94 = arith.constant 0 : index
      %c0_95 = arith.constant 0 : index
      %143 = vector.load %arg5[%c0_94, %c0_95] : memref<32x32xf32, #tpu.memory_space<vmem>>, vector<32x32xf32>
      %cst_96 = arith.constant dense<0.000000e+00> : vector<8x32xf32>
      %144 = tpu.matmul %142, %143, %cst_96 {dimension_numbers = #tpu.dot_dimension_numbers<[1], [0], [0], [1], [0, 0, 1, 1], [], []>} : vector<8x32xf32>, vector<32x32xf32>, vector<8x32xf32> -> vector<8x32xf32>
      %c0_97 = arith.constant 0 : index
      %c0_98 = arith.constant 0 : index
      %145 = vector.load %arg6[%c0_97, %c0_98] : memref<1x32xf32, #tpu.memory_space<vmem>>, vector<1x32xf32>
      %146 = vector.broadcast %145 : vector<1x32xf32> to vector<8x32xf32>
      %147 = arith.addf %144, %146 : vector<8x32xf32>
      %c0_99 = arith.constant 0 : index
      %c0_100 = arith.constant 0 : index
      %148 = vector.load %arg12[%c0_99, %c0_100] : memref<8x32xf32, #tpu.memory_space<vmem>>, vector<8x32xf32>
      tpu.vector_store %arg12[%c0_99, %c0_100], %147 {strides = array<i32>} : memref<8x32xf32, #tpu.memory_space<vmem>>, vector<8x32xf32>,
      %cst_101 = arith.constant 0xFF800000 : f32
      %149 = vector.broadcast %cst_101 : f32 to vector<4x8x1xf32>
      %c0_102 = arith.constant 0 : index
      %c0_103 = arith.constant 0 : index
      %c0_104 = arith.constant 0 : index
      %150 = vector.load %arg13[%c0_102, %c0_103, %c0_104] : memref<4x8x1xf32, #tpu.memory_space<vmem>>, vector<4x8x1xf32>
      tpu.vector_store %arg13[%c0_102, %c0_103, %c0_104], %149 {strides = array<i32>} : memref<4x8x1xf32, #tpu.memory_space<vmem>>, vector<4x8x1xf32>,
      %cst_105 = arith.constant 0.000000e+00 : f32
      %151 = vector.broadcast %cst_105 : f32 to vector<4x8x1xf32>
      %c0_106 = arith.constant 0 : index
      %c0_107 = arith.constant 0 : index
      %c0_108 = arith.constant 0 : index
      %152 = vector.load %arg14[%c0_106, %c0_107, %c0_108] : memref<4x8x1xf32, #tpu.memory_space<vmem>>, vector<4x8x1xf32>
      tpu.vector_store %arg14[%c0_106, %c0_107, %c0_108], %151 {strides = array<i32>} : memref<4x8x1xf32, #tpu.memory_space<vmem>>, vector<4x8x1xf32>,
      %cst_109 = arith.constant 0.000000e+00 : f32
      %153 = vector.broadcast %cst_109 : f32 to vector<8x32xf32>
      %c0_110 = arith.constant 0 : index
      %c0_111 = arith.constant 0 : index
      %154 = vector.load %arg15[%c0_110, %c0_111] : memref<8x32xf32, #tpu.memory_space<vmem>>, vector<8x32xf32>
      tpu.vector_store %arg15[%c0_110, %c0_111], %153 {strides = array<i32>} : memref<8x32xf32, #tpu.memory_space<vmem>>, vector<8x32xf32>,
    } else {
    }
    %c0 = arith.constant 0 : index
    %c0_1 = arith.constant 0 : index
    %c0_2 = arith.constant 0 : index
    %3 = vector.load %arg4[%c0, %c0_1, %c0_2] : memref<1x8x32xf32, #tpu.memory_space<vmem>>, vector<1x8x32xf32>
    %4 = vector.shape_cast %3 : vector<1x8x32xf32> to vector<8x32xf32>
    %c0_3 = arith.constant 0 : index
    %c0_4 = arith.constant 0 : index
    %5 = vector.load %arg7[%c0_3, %c0_4] : memref<32x64xf32, #tpu.memory_space<vmem>>, vector<32x64xf32>
    %cst = arith.constant dense<0.000000e+00> : vector<8x64xf32>
    %6 = tpu.matmul %4, %5, %cst {dimension_numbers = #tpu.dot_dimension_numbers<[1], [0], [0], [1], [0, 0, 1, 1], [], []>} : vector<8x32xf32>, vector<32x64xf32>, vector<8x64xf32> -> vector<8x64xf32>
    %c0_5 = arith.constant 0 : index
    %c0_6 = arith.constant 0 : index
    %7 = vector.load %arg8[%c0_5, %c0_6] : memref<1x64xf32, #tpu.memory_space<vmem>>, vector<1x64xf32>
    %8 = vector.broadcast %7 : vector<1x64xf32> to vector<8x64xf32>
    %9 = arith.addf %6, %8 : vector<8x64xf32>
    %c0_7 = arith.constant 0 : index
    %c0_8 = arith.constant 0 : index
    %10 = vector.load %arg12[%c0_7, %c0_8] : memref<8x32xf32, #tpu.memory_space<vmem>>, vector<8x8xf32>
    %11 = vector.extract_strided_slice %9 {offsets = [0, 0], sizes = [8, 8], strides = [1, 1]} : vector<8x64xf32> to vector<8x8xf32>
    %12 = vector.extract_strided_slice %9 {offsets = [0, 32], sizes = [8, 8], strides = [1, 1]} : vector<8x64xf32> to vector<8x8xf32>
    "tpu.trace_start"() <{level = 10 : i32, message = "qd,kd->qk"}> : () -> ()
    %cst_9 = arith.constant dense<0.000000e+00> : vector<8x8xf32>
    %13 = tpu.matmul %10, %11, %cst_9 {dimension_numbers = #tpu.dot_dimension_numbers<[1], [1], [0], [0], [0, 0, 1, 0], [], []>} : vector<8x8xf32>, vector<8x8xf32>, vector<8x8xf32> -> vector<8x8xf32>
    "tpu.trace_stop"() : () -> ()
    %c0_10 = arith.constant 0 : index
    %c0_11 = arith.constant 0 : index
    %c0_12 = arith.constant 0 : index
    %14 = vector.load %arg13[%c0_10, %c0_11, %c0_12] : memref<4x8x1xf32, #tpu.memory_space<vmem>>, vector<1x8x1xf32>
    %15 = vector.shape_cast %14 : vector<1x8x1xf32> to vector<8x1xf32>
    %cst_13 = arith.constant dense<0xFF800000> : vector<8xf32>
    %16 = vector.multi_reduction <maximumf>, %13, %cst_13 [1] : vector<8x8xf32> to vector<8xf32>
    %17 = vector.shape_cast %16 : vector<8xf32> to vector<8x1xf32>
    %18 = arith.maximumf %15, %17 : vector<8x1xf32>
    %19 = arith.subf %15, %18 : vector<8x1xf32>
    %20 = math.exp %19 : vector<8x1xf32>
    %21 = vector.broadcast %18 : vector<8x1xf32> to vector<8x8xf32>
    %22 = arith.subf %13, %21 : vector<8x8xf32>
    %23 = math.exp %22 : vector<8x8xf32>
    %c0_14 = arith.constant 0 : index
    %c0_15 = arith.constant 0 : index
    %c0_16 = arith.constant 0 : index
    %24 = vector.load %arg14[%c0_14, %c0_15, %c0_16] : memref<4x8x1xf32, #tpu.memory_space<vmem>>, vector<1x8x1xf32>
    %25 = vector.shape_cast %24 : vector<1x8x1xf32> to vector<8x1xf32>
    %26 = arith.mulf %20, %25 : vector<8x1xf32>
    %cst_17 = arith.constant dense<0.000000e+00> : vector<8xf32>
    %27 = vector.multi_reduction <add>, %23, %cst_17 [1] : vector<8x8xf32> to vector<8xf32>
    %28 = vector.shape_cast %27 : vector<8xf32> to vector<8x1xf32>
    %29 = arith.addf %26, %28 : vector<8x1xf32>
    %c0_18 = arith.constant 0 : index
    %c0_19 = arith.constant 0 : index
    %c0_20 = arith.constant 0 : index
    %30 = vector.load %arg14[%c0_18, %c0_19, %c0_20] : memref<4x8x1xf32, #tpu.memory_space<vmem>>, vector<1x8x1xf32>
    %31 = vector.shape_cast %30 : vector<1x8x1xf32> to vector<8x1xf32>
    %32 = vector.shape_cast %29 : vector<8x1xf32> to vector<1x8x1xf32>
    tpu.vector_store %arg14[%c0_18, %c0_19, %c0_20], %32 {strides = array<i32>} : memref<4x8x1xf32, #tpu.memory_space<vmem>>, vector<1x8x1xf32>,
    %cst_21 = arith.constant dense<0.000000e+00> : vector<8x8xf32>
    %33 = tpu.matmul %23, %12, %cst_21 {dimension_numbers = #tpu.dot_dimension_numbers<[1], [0], [0], [1], [0, 0, 1, 1], [], []>} : vector<8x8xf32>, vector<8x8xf32>, vector<8x8xf32> -> vector<8x8xf32>
    %c0_22 = arith.constant 0 : index
    %c0_23 = arith.constant 0 : index
    %34 = vector.load %arg15[%c0_22, %c0_23] : memref<8x32xf32, #tpu.memory_space<vmem>>, vector<8x8xf32>
    %35 = vector.broadcast %20 : vector<8x1xf32> to vector<8x8xf32>
    %36 = arith.mulf %35, %34 : vector<8x8xf32>
    %37 = arith.addf %36, %33 : vector<8x8xf32>
    %c0_24 = arith.constant 0 : index
    %c0_25 = arith.constant 0 : index
    %38 = vector.load %arg15[%c0_24, %c0_25] : memref<8x32xf32, #tpu.memory_space<vmem>>, vector<8x8xf32>
    tpu.vector_store %arg15[%c0_24, %c0_25], %37 {strides = array<i32>} : memref<8x32xf32, #tpu.memory_space<vmem>>, vector<8x8xf32>,
    %c0_26 = arith.constant 0 : index
    %c0_27 = arith.constant 0 : index
    %c0_28 = arith.constant 0 : index
    %39 = vector.load %arg13[%c0_26, %c0_27, %c0_28] : memref<4x8x1xf32, #tpu.memory_space<vmem>>, vector<1x8x1xf32>
    %40 = vector.shape_cast %39 : vector<1x8x1xf32> to vector<8x1xf32>
    %41 = vector.shape_cast %18 : vector<8x1xf32> to vector<1x8x1xf32>
    tpu.vector_store %arg13[%c0_26, %c0_27, %c0_28], %41 {strides = array<i32>} : memref<4x8x1xf32, #tpu.memory_space<vmem>>, vector<1x8x1xf32>,
    %c0_29 = arith.constant 0 : index
    %c8 = arith.constant 8 : index
    %42 = vector.load %arg12[%c0_29, %c8] : memref<8x32xf32, #tpu.memory_space<vmem>>, vector<8x8xf32>
    %43 = vector.extract_strided_slice %9 {offsets = [0, 8], sizes = [8, 8], strides = [1, 1]} : vector<8x64xf32> to vector<8x8xf32>
    %44 = vector.extract_strided_slice %9 {offsets = [0, 40], sizes = [8, 8], strides = [1, 1]} : vector<8x64xf32> to vector<8x8xf32>
    "tpu.trace_start"() <{level = 10 : i32, message = "qd,kd->qk"}> : () -> ()
    %cst_30 = arith.constant dense<0.000000e+00> : vector<8x8xf32>
    %45 = tpu.matmul %42, %43, %cst_30 {dimension_numbers = #tpu.dot_dimension_numbers<[1], [1], [0], [0], [0, 0, 1, 0], [], []>} : vector<8x8xf32>, vector<8x8xf32>, vector<8x8xf32> -> vector<8x8xf32>
    "tpu.trace_stop"() : () -> ()
    %c1 = arith.constant 1 : index
    %c0_31 = arith.constant 0 : index
    %c0_32 = arith.constant 0 : index
    %46 = vector.load %arg13[%c1, %c0_31, %c0_32] : memref<4x8x1xf32, #tpu.memory_space<vmem>>, vector<1x8x1xf32>
    %47 = vector.shape_cast %46 : vector<1x8x1xf32> to vector<8x1xf32>
    %cst_33 = arith.constant dense<0xFF800000> : vector<8xf32>
    %48 = vector.multi_reduction <maximumf>, %45, %cst_33 [1] : vector<8x8xf32> to vector<8xf32>
    %49 = vector.shape_cast %48 : vector<8xf32> to vector<8x1xf32>
    %50 = arith.maximumf %47, %49 : vector<8x1xf32>
    %51 = arith.subf %47, %50 : vector<8x1xf32>
    %52 = math.exp %51 : vector<8x1xf32>
    %53 = vector.broadcast %50 : vector<8x1xf32> to vector<8x8xf32>
    %54 = arith.subf %45, %53 : vector<8x8xf32>
    %55 = math.exp %54 : vector<8x8xf32>
    %c1_34 = arith.constant 1 : index
    %c0_35 = arith.constant 0 : index
    %c0_36 = arith.constant 0 : index
    %56 = vector.load %arg14[%c1_34, %c0_35, %c0_36] : memref<4x8x1xf32, #tpu.memory_space<vmem>>, vector<1x8x1xf32>
    %57 = vector.shape_cast %56 : vector<1x8x1xf32> to vector<8x1xf32>
    %58 = arith.mulf %52, %57 : vector<8x1xf32>
    %cst_37 = arith.constant dense<0.000000e+00> : vector<8xf32>
    %59 = vector.multi_reduction <add>, %55, %cst_37 [1] : vector<8x8xf32> to vector<8xf32>
    %60 = vector.shape_cast %59 : vector<8xf32> to vector<8x1xf32>
    %61 = arith.addf %58, %60 : vector<8x1xf32>
    %c1_38 = arith.constant 1 : index
    %c0_39 = arith.constant 0 : index
    %c0_40 = arith.constant 0 : index
    %62 = vector.load %arg14[%c1_38, %c0_39, %c0_40] : memref<4x8x1xf32, #tpu.memory_space<vmem>>, vector<1x8x1xf32>
    %63 = vector.shape_cast %62 : vector<1x8x1xf32> to vector<8x1xf32>
    %64 = vector.shape_cast %61 : vector<8x1xf32> to vector<1x8x1xf32>
    tpu.vector_store %arg14[%c1_38, %c0_39, %c0_40], %64 {strides = array<i32>} : memref<4x8x1xf32, #tpu.memory_space<vmem>>, vector<1x8x1xf32>,
    %cst_41 = arith.constant dense<0.000000e+00> : vector<8x8xf32>
    %65 = tpu.matmul %55, %44, %cst_41 {dimension_numbers = #tpu.dot_dimension_numbers<[1], [0], [0], [1], [0, 0, 1, 1], [], []>} : vector<8x8xf32>, vector<8x8xf32>, vector<8x8xf32> -> vector<8x8xf32>
    %c0_42 = arith.constant 0 : index
    %c8_43 = arith.constant 8 : index
    %66 = vector.load %arg15[%c0_42, %c8_43] : memref<8x32xf32, #tpu.memory_space<vmem>>, vector<8x8xf32>
    %67 = vector.broadcast %52 : vector<8x1xf32> to vector<8x8xf32>
    %68 = arith.mulf %67, %66 : vector<8x8xf32>
    %69 = arith.addf %68, %65 : vector<8x8xf32>
    %c0_44 = arith.constant 0 : index
    %c8_45 = arith.constant 8 : index
    %70 = vector.load %arg15[%c0_44, %c8_45] : memref<8x32xf32, #tpu.memory_space<vmem>>, vector<8x8xf32>
    tpu.vector_store %arg15[%c0_44, %c8_45], %69 {strides = array<i32>} : memref<8x32xf32, #tpu.memory_space<vmem>>, vector<8x8xf32>,
    %c1_46 = arith.constant 1 : index
    %c0_47 = arith.constant 0 : index
    %c0_48 = arith.constant 0 : index
    %71 = vector.load %arg13[%c1_46, %c0_47, %c0_48] : memref<4x8x1xf32, #tpu.memory_space<vmem>>, vector<1x8x1xf32>
    %72 = vector.shape_cast %71 : vector<1x8x1xf32> to vector<8x1xf32>
    %73 = vector.shape_cast %50 : vector<8x1xf32> to vector<1x8x1xf32>
    tpu.vector_store %arg13[%c1_46, %c0_47, %c0_48], %73 {strides = array<i32>} : memref<4x8x1xf32, #tpu.memory_space<vmem>>, vector<1x8x1xf32>,
    %c0_49 = arith.constant 0 : index
    %c16 = arith.constant 16 : index
    %74 = vector.load %arg12[%c0_49, %c16] : memref<8x32xf32, #tpu.memory_space<vmem>>, vector<8x8xf32>
    %75 = vector.extract_strided_slice %9 {offsets = [0, 16], sizes = [8, 8], strides = [1, 1]} : vector<8x64xf32> to vector<8x8xf32>
    %76 = vector.extract_strided_slice %9 {offsets = [0, 48], sizes = [8, 8], strides = [1, 1]} : vector<8x64xf32> to vector<8x8xf32>
    "tpu.trace_start"() <{level = 10 : i32, message = "qd,kd->qk"}> : () -> ()
    %cst_50 = arith.constant dense<0.000000e+00> : vector<8x8xf32>
    %77 = tpu.matmul %74, %75, %cst_50 {dimension_numbers = #tpu.dot_dimension_numbers<[1], [1], [0], [0], [0, 0, 1, 0], [], []>} : vector<8x8xf32>, vector<8x8xf32>, vector<8x8xf32> -> vector<8x8xf32>
    "tpu.trace_stop"() : () -> ()
    %c2 = arith.constant 2 : index
    %c0_51 = arith.constant 0 : index
    %c0_52 = arith.constant 0 : index
    %78 = vector.load %arg13[%c2, %c0_51, %c0_52] : memref<4x8x1xf32, #tpu.memory_space<vmem>>, vector<1x8x1xf32>
    %79 = vector.shape_cast %78 : vector<1x8x1xf32> to vector<8x1xf32>
    %cst_53 = arith.constant dense<0xFF800000> : vector<8xf32>
    %80 = vector.multi_reduction <maximumf>, %77, %cst_53 [1] : vector<8x8xf32> to vector<8xf32>
    %81 = vector.shape_cast %80 : vector<8xf32> to vector<8x1xf32>
    %82 = arith.maximumf %79, %81 : vector<8x1xf32>
    %83 = arith.subf %79, %82 : vector<8x1xf32>
    %84 = math.exp %83 : vector<8x1xf32>
    %85 = vector.broadcast %82 : vector<8x1xf32> to vector<8x8xf32>
    %86 = arith.subf %77, %85 : vector<8x8xf32>
    %87 = math.exp %86 : vector<8x8xf32>
    %c2_54 = arith.constant 2 : index
    %c0_55 = arith.constant 0 : index
    %c0_56 = arith.constant 0 : index
    %88 = vector.load %arg14[%c2_54, %c0_55, %c0_56] : memref<4x8x1xf32, #tpu.memory_space<vmem>>, vector<1x8x1xf32>
    %89 = vector.shape_cast %88 : vector<1x8x1xf32> to vector<8x1xf32>
    %90 = arith.mulf %84, %89 : vector<8x1xf32>
    %cst_57 = arith.constant dense<0.000000e+00> : vector<8xf32>
    %91 = vector.multi_reduction <add>, %87, %cst_57 [1] : vector<8x8xf32> to vector<8xf32>
    %92 = vector.shape_cast %91 : vector<8xf32> to vector<8x1xf32>
    %93 = arith.addf %90, %92 : vector<8x1xf32>
    %c2_58 = arith.constant 2 : index
    %c0_59 = arith.constant 0 : index
    %c0_60 = arith.constant 0 : index
    %94 = vector.load %arg14[%c2_58, %c0_59, %c0_60] : memref<4x8x1xf32, #tpu.memory_space<vmem>>, vector<1x8x1xf32>
    %95 = vector.shape_cast %94 : vector<1x8x1xf32> to vector<8x1xf32>
    %96 = vector.shape_cast %93 : vector<8x1xf32> to vector<1x8x1xf32>
    tpu.vector_store %arg14[%c2_58, %c0_59, %c0_60], %96 {strides = array<i32>} : memref<4x8x1xf32, #tpu.memory_space<vmem>>, vector<1x8x1xf32>,
    %cst_61 = arith.constant dense<0.000000e+00> : vector<8x8xf32>
    %97 = tpu.matmul %87, %76, %cst_61 {dimension_numbers = #tpu.dot_dimension_numbers<[1], [0], [0], [1], [0, 0, 1, 1], [], []>} : vector<8x8xf32>, vector<8x8xf32>, vector<8x8xf32> -> vector<8x8xf32>
    %c0_62 = arith.constant 0 : index
    %c16_63 = arith.constant 16 : index
    %98 = vector.load %arg15[%c0_62, %c16_63] : memref<8x32xf32, #tpu.memory_space<vmem>>, vector<8x8xf32>
    %99 = vector.broadcast %84 : vector<8x1xf32> to vector<8x8xf32>
    %100 = arith.mulf %99, %98 : vector<8x8xf32>
    %101 = arith.addf %100, %97 : vector<8x8xf32>
    %c0_64 = arith.constant 0 : index
    %c16_65 = arith.constant 16 : index
    %102 = vector.load %arg15[%c0_64, %c16_65] : memref<8x32xf32, #tpu.memory_space<vmem>>, vector<8x8xf32>
    tpu.vector_store %arg15[%c0_64, %c16_65], %101 {strides = array<i32>} : memref<8x32xf32, #tpu.memory_space<vmem>>, vector<8x8xf32>,
    %c2_66 = arith.constant 2 : index
    %c0_67 = arith.constant 0 : index
    %c0_68 = arith.constant 0 : index
    %103 = vector.load %arg13[%c2_66, %c0_67, %c0_68] : memref<4x8x1xf32, #tpu.memory_space<vmem>>, vector<1x8x1xf32>
    %104 = vector.shape_cast %103 : vector<1x8x1xf32> to vector<8x1xf32>
    %105 = vector.shape_cast %82 : vector<8x1xf32> to vector<1x8x1xf32>
    tpu.vector_store %arg13[%c2_66, %c0_67, %c0_68], %105 {strides = array<i32>} : memref<4x8x1xf32, #tpu.memory_space<vmem>>, vector<1x8x1xf32>,
    %c0_69 = arith.constant 0 : index
    %c24 = arith.constant 24 : index
    %106 = vector.load %arg12[%c0_69, %c24] : memref<8x32xf32, #tpu.memory_space<vmem>>, vector<8x8xf32>
    %107 = vector.extract_strided_slice %9 {offsets = [0, 24], sizes = [8, 8], strides = [1, 1]} : vector<8x64xf32> to vector<8x8xf32>
    %108 = vector.extract_strided_slice %9 {offsets = [0, 56], sizes = [8, 8], strides = [1, 1]} : vector<8x64xf32> to vector<8x8xf32>
    "tpu.trace_start"() <{level = 10 : i32, message = "qd,kd->qk"}> : () -> ()
    %cst_70 = arith.constant dense<0.000000e+00> : vector<8x8xf32>
    %109 = tpu.matmul %106, %107, %cst_70 {dimension_numbers = #tpu.dot_dimension_numbers<[1], [1], [0], [0], [0, 0, 1, 0], [], []>} : vector<8x8xf32>, vector<8x8xf32>, vector<8x8xf32> -> vector<8x8xf32>
    "tpu.trace_stop"() : () -> ()
    %c3 = arith.constant 3 : index
    %c0_71 = arith.constant 0 : index
    %c0_72 = arith.constant 0 : index
    %110 = vector.load %arg13[%c3, %c0_71, %c0_72] : memref<4x8x1xf32, #tpu.memory_space<vmem>>, vector<1x8x1xf32>
    %111 = vector.shape_cast %110 : vector<1x8x1xf32> to vector<8x1xf32>
    %cst_73 = arith.constant dense<0xFF800000> : vector<8xf32>
    %112 = vector.multi_reduction <maximumf>, %109, %cst_73 [1] : vector<8x8xf32> to vector<8xf32>
    %113 = vector.shape_cast %112 : vector<8xf32> to vector<8x1xf32>
    %114 = arith.maximumf %111, %113 : vector<8x1xf32>
    %115 = arith.subf %111, %114 : vector<8x1xf32>
    %116 = math.exp %115 : vector<8x1xf32>
    %117 = vector.broadcast %114 : vector<8x1xf32> to vector<8x8xf32>
    %118 = arith.subf %109, %117 : vector<8x8xf32>
    %119 = math.exp %118 : vector<8x8xf32>
    %c3_74 = arith.constant 3 : index
    %c0_75 = arith.constant 0 : index
    %c0_76 = arith.constant 0 : index
    %120 = vector.load %arg14[%c3_74, %c0_75, %c0_76] : memref<4x8x1xf32, #tpu.memory_space<vmem>>, vector<1x8x1xf32>
    %121 = vector.shape_cast %120 : vector<1x8x1xf32> to vector<8x1xf32>
    %122 = arith.mulf %116, %121 : vector<8x1xf32>
    %cst_77 = arith.constant dense<0.000000e+00> : vector<8xf32>
    %123 = vector.multi_reduction <add>, %119, %cst_77 [1] : vector<8x8xf32> to vector<8xf32>
    %124 = vector.shape_cast %123 : vector<8xf32> to vector<8x1xf32>
    %125 = arith.addf %122, %124 : vector<8x1xf32>
    %c3_78 = arith.constant 3 : index
    %c0_79 = arith.constant 0 : index
    %c0_80 = arith.constant 0 : index
    %126 = vector.load %arg14[%c3_78, %c0_79, %c0_80] : memref<4x8x1xf32, #tpu.memory_space<vmem>>, vector<1x8x1xf32>
    %127 = vector.shape_cast %126 : vector<1x8x1xf32> to vector<8x1xf32>
    %128 = vector.shape_cast %125 : vector<8x1xf32> to vector<1x8x1xf32>
    tpu.vector_store %arg14[%c3_78, %c0_79, %c0_80], %128 {strides = array<i32>} : memref<4x8x1xf32, #tpu.memory_space<vmem>>, vector<1x8x1xf32>,
    %cst_81 = arith.constant dense<0.000000e+00> : vector<8x8xf32>
    %129 = tpu.matmul %119, %108, %cst_81 {dimension_numbers = #tpu.dot_dimension_numbers<[1], [0], [0], [1], [0, 0, 1, 1], [], []>} : vector<8x8xf32>, vector<8x8xf32>, vector<8x8xf32> -> vector<8x8xf32>
    %c0_82 = arith.constant 0 : index
    %c24_83 = arith.constant 24 : index
    %130 = vector.load %arg15[%c0_82, %c24_83] : memref<8x32xf32, #tpu.memory_space<vmem>>, vector<8x8xf32>
    %131 = vector.broadcast %116 : vector<8x1xf32> to vector<8x8xf32>
    %132 = arith.mulf %131, %130 : vector<8x8xf32>
    %133 = arith.addf %132, %129 : vector<8x8xf32>
    %c0_84 = arith.constant 0 : index
    %c24_85 = arith.constant 24 : index
    %134 = vector.load %arg15[%c0_84, %c24_85] : memref<8x32xf32, #tpu.memory_space<vmem>>, vector<8x8xf32>
    tpu.vector_store %arg15[%c0_84, %c24_85], %133 {strides = array<i32>} : memref<8x32xf32, #tpu.memory_space<vmem>>, vector<8x8xf32>,
    %c3_86 = arith.constant 3 : index
    %c0_87 = arith.constant 0 : index
    %c0_88 = arith.constant 0 : index
    %135 = vector.load %arg13[%c3_86, %c0_87, %c0_88] : memref<4x8x1xf32, #tpu.memory_space<vmem>>, vector<1x8x1xf32>
    %136 = vector.shape_cast %135 : vector<1x8x1xf32> to vector<8x1xf32>
    %137 = vector.shape_cast %114 : vector<8x1xf32> to vector<1x8x1xf32>
    tpu.vector_store %arg13[%c3_86, %c0_87, %c0_88], %137 {strides = array<i32>} : memref<4x8x1xf32, #tpu.memory_space<vmem>>, vector<1x8x1xf32>,
    %c0_i32_89 = arith.constant 0 : i32
    %138 = arith.cmpi eq, %arg2, %c0_i32_89 : i32
    %139 = arith.extui %138 : i1 to i32
    %c0_i32_90 = arith.constant 0 : i32
    %140 = arith.cmpi ne, %139, %c0_i32_90 : i32
    scf.if %140 {
      %c0_91 = arith.constant 0 : index
      %c0_92 = arith.constant 0 : index
      %c0_93 = arith.constant 0 : index
      %141 = vector.load %arg14[%c0_91, %c0_92, %c0_93] : memref<4x8x1xf32, #tpu.memory_space<vmem>>, vector<1x8x1xf32>
      %142 = vector.shape_cast %141 : vector<1x8x1xf32> to vector<8x1xf32>
      %143 = tpu.reciprocal %142 {approx = true} : vector<8x1xf32> -> vector<8x1xf32>
      %c0_94 = arith.constant 0 : index
      %c0_95 = arith.constant 0 : index
      %144 = vector.load %arg15[%c0_94, %c0_95] : memref<8x32xf32, #tpu.memory_space<vmem>>, vector<8x8xf32>
      %145 = vector.broadcast %143 : vector<8x1xf32> to vector<8x8xf32>
      %146 = arith.mulf %144, %145 : vector<8x8xf32>
      %c0_96 = arith.constant 0 : index
      %c0_97 = arith.constant 0 : index
      %147 = vector.load %arg15[%c0_96, %c0_97] : memref<8x32xf32, #tpu.memory_space<vmem>>, vector<8x8xf32>
      tpu.vector_store %arg15[%c0_96, %c0_97], %146 {strides = array<i32>} : memref<8x32xf32, #tpu.memory_space<vmem>>, vector<8x8xf32>,
      %c1_98 = arith.constant 1 : index
      %c0_99 = arith.constant 0 : index
      %c0_100 = arith.constant 0 : index
      %148 = vector.load %arg14[%c1_98, %c0_99, %c0_100] : memref<4x8x1xf32, #tpu.memory_space<vmem>>, vector<1x8x1xf32>
      %149 = vector.shape_cast %148 : vector<1x8x1xf32> to vector<8x1xf32>
      %150 = tpu.reciprocal %149 {approx = true} : vector<8x1xf32> -> vector<8x1xf32>
      %c0_101 = arith.constant 0 : index
      %c8_102 = arith.constant 8 : index
      %151 = vector.load %arg15[%c0_101, %c8_102] : memref<8x32xf32, #tpu.memory_space<vmem>>, vector<8x8xf32>
      %152 = vector.broadcast %150 : vector<8x1xf32> to vector<8x8xf32>
      %153 = arith.mulf %151, %152 : vector<8x8xf32>
      %c0_103 = arith.constant 0 : index
      %c8_104 = arith.constant 8 : index
      %154 = vector.load %arg15[%c0_103, %c8_104] : memref<8x32xf32, #tpu.memory_space<vmem>>, vector<8x8xf32>
      tpu.vector_store %arg15[%c0_103, %c8_104], %153 {strides = array<i32>} : memref<8x32xf32, #tpu.memory_space<vmem>>, vector<8x8xf32>,
      %c2_105 = arith.constant 2 : index
      %c0_106 = arith.constant 0 : index
      %c0_107 = arith.constant 0 : index
      %155 = vector.load %arg14[%c2_105, %c0_106, %c0_107] : memref<4x8x1xf32, #tpu.memory_space<vmem>>, vector<1x8x1xf32>
      %156 = vector.shape_cast %155 : vector<1x8x1xf32> to vector<8x1xf32>
      %157 = tpu.reciprocal %156 {approx = true} : vector<8x1xf32> -> vector<8x1xf32>
      %c0_108 = arith.constant 0 : index
      %c16_109 = arith.constant 16 : index
      %158 = vector.load %arg15[%c0_108, %c16_109] : memref<8x32xf32, #tpu.memory_space<vmem>>, vector<8x8xf32>
      %159 = vector.broadcast %157 : vector<8x1xf32> to vector<8x8xf32>
      %160 = arith.mulf %158, %159 : vector<8x8xf32>
      %c0_110 = arith.constant 0 : index
      %c16_111 = arith.constant 16 : index
      %161 = vector.load %arg15[%c0_110, %c16_111] : memref<8x32xf32, #tpu.memory_space<vmem>>, vector<8x8xf32>
      tpu.vector_store %arg15[%c0_110, %c16_111], %160 {strides = array<i32>} : memref<8x32xf32, #tpu.memory_space<vmem>>, vector<8x8xf32>,
      %c3_112 = arith.constant 3 : index
      %c0_113 = arith.constant 0 : index
      %c0_114 = arith.constant 0 : index
      %162 = vector.load %arg14[%c3_112, %c0_113, %c0_114] : memref<4x8x1xf32, #tpu.memory_space<vmem>>, vector<1x8x1xf32>
      %163 = vector.shape_cast %162 : vector<1x8x1xf32> to vector<8x1xf32>
      %164 = tpu.reciprocal %163 {approx = true} : vector<8x1xf32> -> vector<8x1xf32>
      %c0_115 = arith.constant 0 : index
      %c24_116 = arith.constant 24 : index
      %165 = vector.load %arg15[%c0_115, %c24_116] : memref<8x32xf32, #tpu.memory_space<vmem>>, vector<8x8xf32>
      %166 = vector.broadcast %164 : vector<8x1xf32> to vector<8x8xf32>
      %167 = arith.mulf %165, %166 : vector<8x8xf32>
      %c0_117 = arith.constant 0 : index
      %c24_118 = arith.constant 24 : index
      %168 = vector.load %arg15[%c0_117, %c24_118] : memref<8x32xf32, #tpu.memory_space<vmem>>, vector<8x8xf32>
      tpu.vector_store %arg15[%c0_117, %c24_118], %167 {strides = array<i32>} : memref<8x32xf32, #tpu.memory_space<vmem>>, vector<8x8xf32>,
      %c0_119 = arith.constant 0 : index
      %c0_120 = arith.constant 0 : index
      %169 = vector.load %arg15[%c0_119, %c0_120] : memref<8x32xf32, #tpu.memory_space<vmem>>, vector<8x32xf32>
      %c0_121 = arith.constant 0 : index
      %c0_122 = arith.constant 0 : index
      %170 = vector.load %arg9[%c0_121, %c0_122] : memref<32x128xf32, #tpu.memory_space<vmem>>, vector<32x128xf32>
      %cst_123 = arith.constant dense<0.000000e+00> : vector<8x128xf32>
      %171 = tpu.matmul %169, %170, %cst_123 {dimension_numbers = #tpu.dot_dimension_numbers<[1], [0], [0], [1], [0, 0, 1, 1], [], []>} : vector<8x32xf32>, vector<32x128xf32>, vector<8x128xf32> -> vector<8x128xf32>
      %c0_124 = arith.constant 0 : index
      %c0_125 = arith.constant 0 : index
      %172 = vector.load %arg10[%c0_124, %c0_125] : memref<1x128xf32, #tpu.memory_space<vmem>>, vector<1x128xf32>
      %173 = vector.broadcast %172 : vector<1x128xf32> to vector<8x128xf32>
      %174 = arith.addf %171, %173 : vector<8x128xf32>
      %c0_126 = arith.constant 0 : index
      %c0_127 = arith.constant 0 : index
      %c0_128 = arith.constant 0 : index
      %175 = vector.load %arg11[%c0_126, %c0_127, %c0_128] : memref<1x8x128xf32, #tpu.memory_space<vmem>>, vector<1x8x128xf32>
      %176 = vector.shape_cast %175 : vector<1x8x128xf32> to vector<8x128xf32>
      %177 = vector.shape_cast %174 : vector<8x128xf32> to vector<1x8x128xf32>
      tpu.vector_store %arg11[%c0_126, %c0_127, %c0_128], %177 {strides = array<i32>} : memref<1x8x128xf32, #tpu.memory_space<vmem>>, vector<1x8x128xf32>,
    } else {
    }
    return
  }
  func.func @transform_0(%arg0: i32, %arg1: i32, %arg2: i32) -> (i32, i32, i32) {
    %c0_i32 = arith.constant 0 : i32
    %c0_i32_0 = arith.constant 0 : i32
    return %arg0, %arg1, %c0_i32 : i32, i32, i32
  }
  func.func @transform_1(%arg0: i32, %arg1: i32, %arg2: i32) -> (i32, i32, i32) {
    %c0_i32 = arith.constant 0 : i32
    %c0_i32_0 = arith.constant 0 : i32
    return %arg0, %arg2, %c0_i32 : i32, i32, i32
  }
  func.func @transform_2(%arg0: i32, %arg1: i32, %arg2: i32) -> (i32, i32) {
    %c0_i32 = arith.constant 0 : i32
    %c0_i32_0 = arith.constant 0 : i32
    %c0_i32_1 = arith.constant 0 : i32
    return %c0_i32, %c0_i32_0 : i32, i32
  }
  func.func @transform_3(%arg0: i32, %arg1: i32, %arg2: i32) -> (i32, i32) {
    %c0_i32 = arith.constant 0 : i32
    %c0_i32_0 = arith.constant 0 : i32
    %c0_i32_1 = arith.constant 0 : i32
    return %c0_i32, %c0_i32_0 : i32, i32
  }
  func.func @transform_4(%arg0: i32, %arg1: i32, %arg2: i32) -> (i32, i32) {
    %c0_i32 = arith.constant 0 : i32
    %c0_i32_0 = arith.constant 0 : i32
    %c0_i32_1 = arith.constant 0 : i32
    return %c0_i32, %c0_i32_0 : i32, i32
  }
  func.func @transform_5(%arg0: i32, %arg1: i32, %arg2: i32) -> (i32, i32) {
    %c0_i32 = arith.constant 0 : i32
    %c0_i32_0 = arith.constant 0 : i32
    %c0_i32_1 = arith.constant 0 : i32
    return %c0_i32, %c0_i32_0 : i32, i32
  }
  func.func @transform_6(%arg0: i32, %arg1: i32, %arg2: i32) -> (i32, i32) {
    %c0_i32 = arith.constant 0 : i32
    %c0_i32_0 = arith.constant 0 : i32
    %c0_i32_1 = arith.constant 0 : i32
    return %c0_i32, %c0_i32_0 : i32, i32
  }
  func.func @transform_7(%arg0: i32, %arg1: i32, %arg2: i32) -> (i32, i32) {
    %c0_i32 = arith.constant 0 : i32
    %c0_i32_0 = arith.constant 0 : i32
    %c0_i32_1 = arith.constant 0 : i32
    return %c0_i32, %c0_i32_0 : i32, i32
  }
  func.func @transform_8(%arg0: i32, %arg1: i32, %arg2: i32) -> (i32, i32, i32) {
    %c0_i32 = arith.constant 0 : i32
    %c0_i32_0 = arith.constant 0 : i32
    return %arg0, %arg1, %c0_i32 : i32, i32, i32
  }
}

</mosaic_0001>

<bundles_post_ra>
// kernel: tpu_custom_call.1
= control target key start
LH: loop header
LB: loop body
LE: loop exit
PB: predicated region body
PF: predicated region fallthrough
CT: control target
= control target key end

     0   :  { %s2629_s0 = inlined_call_operand.hbm [shape: f32[2,8,32], index: 0, kind: input, shape index: {}]   ;;  %s2630_s1 = inlined_call_operand.hbm [shape: f32[2,8,32], index: 1, kind: input, shape index: {}]   ;;  %s2631_s2 = inlined_call_operand.hbm [shape: f32[32,32], index: 2, kind: input, shape index: {}]   ;;  %s2632_s3 = inlined_call_operand.vmem [shape: f32[1,32], index: 3, kind: input, shape index: {}]   ;;  %s2633_s4 = inlined_call_operand.hbm [shape: f32[32,64], index: 4, kind: input, shape index: {}]   ;;  %s2634_s5 = inlined_call_operand.vmem [shape: f32[1,64], index: 5, kind: input, shape index: {}]   ;;  %s2635_s6 = inlined_call_operand.hbm [shape: f32[32,128], index: 6, kind: input, shape index: {}]   ;;  %s2636_s7 = inlined_call_operand.vmem [shape: f32[1,128], index: 7, kind: input, shape index: {}]   ;;  %s2637_s8 = inlined_call_operand.hbm [shape: f32[2,8,128], index: 8, kind: output, shape index: {}]  }
   0x1   :  { %2642 = sst [smem:[#allocation23_spill]] %s2629_s0 }
   0x2   :  { %2643 = sst [smem:[#allocation24_spill]] %s2631_s2 }
   0x3   :  { %2644 = sst [smem:[#allocation25_spill]] %s2633_s4 }
   0x4   :  { %2645 = sst [smem:[#allocation26_spill]] %s2635_s6 }
   0x5   :  { %13 = vsyncpa [#allocation7], 0 }
   0x6   :  { %15 = vsyncpa [#allocation7 + $0x1], 0 }
   0x7   :  { %16 = vsyncpa [#allocation10], 0 }
   0x8   :  { %18 = vsyncpa [#allocation10 + $0x1], 0 }
   0x9   :  { %19 = vsyncpa [#allocation13], 0 }
   0xa   :  { %20 = vsyncpa [#allocation8], 0 }
   0xb   :  { %22 = vsyncpa [#allocation8 + $0x1], 0  ;;  %s2249_s27 = smov 0   ;;  %s2251_s28 = smov 0  }
   0xc   :  { %s2253_s29 = smov 0   ;;  %s2255_s30 = smov 0  }
   0xd   :  { %s2257_s9 = smov 0   ;;  %s2259_s10 = smov 0  }
   0xe LB: > { %s2280_s11 = sadd.s32 4294967295, %s2180_s10   ;;  %s1671_s12 = sadd.s32 4294967294, %s2180_s10   ;;  %s2180_s10 = sphi %s2259_s10, %s28_s10   ;;  %s2176_s9 = sphi %s2257_s9, %s2672_s9   ;;  %s2172_s30 = sphi %s2255_s30, %s2671_s30   ;;  %s2168_s29 = sphi %s2253_s29, %s2670_s29   ;;  %s2164_s28 = sphi %s2251_s28, %s2669_s28   ;;  %s2160_s27 = sphi %s2249_s27, %s2668_s27  }
   0xf   : > { %p69_p0 = scmp.ne.s32.totalorder %s2164_s28, %s2160_s27  ;;  %p2638_p1 = scmp.eq.s32.totalorder %s2280_s11, 0 }
  0x10   : > { %p255_p3 = scmp.eq.s32.totalorder %s1671_s12, 1  ;;  %p1672_p5 = scmp.ge.s32.totalorder %s2180_s10, 1 }
  0x11   : > { %p2289_p4 = por %p2638_p1, %p69_p0  ;;  %p262_p7 = scmp.lt.s32.totalorder %s2180_s10, 3 }
  0x12   : > { %p2294_p6 = por %p255_p3, %p69_p0  ;;  %s2182_s16 = smov [#allocation11]  }
  0x13   : > { %s2646_s13 = scalar_select %p2289_p4, 1, 0 }
  0x14   : > { %s2647_s14 = scalar_select %p2294_p6, 1, 0 }
  0x15   : > { %p2299_p8 = pnand %p1672_p5, %p262_p7  ;;  %s274_s17 = sshll.u32 %s2182_s16, 4  ;;  %s275_s17 = int_to_ptr.vmem [resolvable:$true] %s274_s17 }
  0x16   : > { %2648 = sst [smem:[#allocation21_spill]] %s2647_s14  ;;  %s2183_s19 = smov [#allocation12]  }
  0x17   : > { %p1832_p9 = pneg %p2299_p8  ;;  %s290_s20 = sshll.u32 %s2183_s19, 4  ;;  %s291_s20 = int_to_ptr.vmem [resolvable:$true] %s290_s20 }
  0x18   : > { %s2184_s21 = smov [#allocation14]   ;;  %s1965_s23 = scalar_lea.vmem %s275_s17, 512 }
  0x19   : > { %p2308_p11 = pnand %p1832_p9, %p2638_p1  ;;  %s306_s22 = sshll.u32 %s2184_s21, 4  ;;  %s307_s22 = int_to_ptr.vmem [resolvable:$true] %s306_s22 }
  0x1a   : > { %p1966_p13 = scmp.ne.s32.totalorder %s275_s17, %s1965_s23  ;;  %p1973_p5 = scmp.lt.s32.totalorder %s275_s17, %s275_s17 }
  0x1b   : > { %p1956_p12 = pneg %p2308_p11  ;;  %p1974_p7 = scmp.lt.s32.totalorder %s1965_s23, %s1965_s23 }
  0x1d   : > { %p1968_p0 = pnand %p1966_p13, %p1956_p12  ;;  %p1975_p9 = por %p1974_p7, %p1973_p5 }
  0x1f   : > { %p1969_p3 = pneg %p1968_p0 }
  0x21   : > { %p1976_p10 = pnand %p1975_p9, %p1969_p3 }
  0x23   : > { %1979 = shalt.err (!%p1976_p10)
}
  0x24   : > { %s2185_s24 = smov 128   ;;  %s2186_s25 = smov 8  }
  0x25   : > { %s2651_s2 = sld [smem:[#allocation24_spill]]  ;;  %s1991_s16 = scalar_lea.vmem %s291_s20, 512 }
  0x26   : > { %p1992_p1 = scmp.ne.s32.totalorder %s291_s20, %s1991_s16  ;;  %p1999_p2 = scmp.lt.s32.totalorder %s291_s20, %s291_s20 }
  0x27   : > { %p2000_p6 = scmp.lt.s32.totalorder %s1991_s16, %s1991_s16 }
  0x28   : > { %p1994_p13 = pnand %p1992_p1, %p1956_p12 }
  0x29   : > { %p2001_p5 = por %p2000_p6, %p1999_p2 }
  0x2a   : > { %p1995_p0 = pneg %p1994_p13 }
  0x2b   : > { %1835 = dma.hbm_to_vmem [thread:$0]  (!%p2308_p11), %s2651_s2, 512, %s275_s17, [#allocation10], %s2185_s24, %s2185_s24, %s2186_s25  }
  0x2c   : > { %p2002_p3 = pnand %p2001_p5, %p1995_p0 }
  0x2e   : > { %2005 = shalt.err (!%p2002_p3)
}
  0x2f   : > { %s2652_s4 = sld [smem:[#allocation25_spill]]  ;;  %s2017_s17 = scalar_lea.vmem %s307_s22, 512 }
  0x30   : > { %p2018_p10 = scmp.ne.s32.totalorder %s307_s22, %s2017_s17  ;;  %p2025_p9 = scmp.lt.s32.totalorder %s307_s22, %s307_s22 }
  0x31   : > { %p2026_p13 = scmp.lt.s32.totalorder %s2017_s17, %s2017_s17 }
  0x32   : > { %p2020_p7 = pnand %p2018_p10, %p1956_p12 }
  0x33   : > { %p2027_p4 = por %p2026_p13, %p2025_p9 }
  0x34   : > { %p2021_p1 = pneg %p2020_p7 }
  0x35   : > { %1838 = dma.hbm_to_vmem [thread:$0]  (!%p2308_p11), %s2652_s4, 512, %s291_s20, [#allocation13], %s2185_s24, %s2185_s24, %s2186_s25  }
  0x36   : > { %p2028_p2 = pnand %p2027_p4, %p2021_p1 }
  0x38   : > { %2031 = shalt.err (!%p2028_p2)
}
  0x39   : > { %s2653_s6 = sld [smem:[#allocation26_spill]]  ;;  %s56_s20 = sadd.s32 1, %s2168_s29 }
  0x3a   : > { %s47_s12 = sadd.s32 1, %s2176_s9  ;;  %p63_p4 = scmp.ne.s32.totalorder %s2168_s29, %s2164_s28 }
  0x3b   : > { %p49_p6 = scmp.ge.s32.totalorder %s47_s12, 2  ;;  %p64_p12 = scmp.eq.s32.totalorder %s2180_s10, 0 }
  0x3c   : > { %p2654_p0 = scmp.eq.s32.totalorder %s2280_s11, 1  ;;  %p1856_p3 = scmp.lt.s32.totalorder %s2180_s10, 2 }
  0x3d   : > { %s2674_s12 = smov (%p49_p6, %s47_s12), 0  ;;  %p65_p10 = por %p64_p12, %p63_p4 }
  0x3e   : > { %p2345_p5 = por %p2654_p0, %p63_p4  ;;  %2656 = sst [smem:[#allocation22_spill]] %s2674_s12 }
  0x3f   : > { %1841 = dma.hbm_to_vmem [thread:$0]  (!%p2308_p11), %s2653_s6, 512, %s307_s22, [#allocation13], %s2185_s24, %s2185_s24, %s2186_s25  }
  0x40   : > { %s323_s16 = sand.u32 1, %s2168_s29   ;;  %s51_s19 = ssub.s32 %s2176_s9, %s2674_s12 }
  0x41   : > { %p54_p11 = scmp.eq.s32.totalorder %s51_s19, 0  ;;  %s1677_s22 = sshll.u32 %s323_s16, 3 }
  0x42   : > { %s1678_s24 = sshll.u32 %s2176_s9, 7  ;;  %s2657_s0 = sld [smem:[#allocation23_spill]] }
  0x43   : > { %s2357_s25 = scalar_select %p54_p11, %s2168_s29, %s56_s20  }
  0x44   : > { %s327_s26 = scalar_lea.vmem [#allocation6], %s1677_s22  ;;  %p2364_p7 = pnand %p1856_p3, %p65_p10 }
  0x45   : > { %s335_s2 = sshll.u32 %s327_s26, 4  ;;  %s2371_s19 = scalar_lea.hbm %s2630_s1, %s1678_s24  ;;  %s336_s2 = int_to_ptr.vmem [resolvable:$true] %s335_s2 }
  0x46   : > { %s342_s20 = sand.u32 1, %s2180_s10   ;;  %s324_s12 = scalar_lea.sflag [#allocation7], %s323_s16 }
  0x47   : > { %p2034_p1 = pneg %p2364_p7  ;;  %s2045_s21 = scalar_lea.vmem %s336_s2, 128 }
  0x48   : > { %s333_s23 = scalar_lea.hbm %s2657_s0, %s1678_s24  ;;  %p2046_p9 = scmp.ne.s32.totalorder %s336_s2, %s2045_s21 }
  0x49   : > { %s2187_s17 = smov [#allocation6]  }
  0x4a   : > { %p2048_p13 = pnand %p2046_p9, %p2034_p1  ;;  %s2050_s26 = sshll.u32 %s2187_s17, 4  ;;  %s2051_s26 = int_to_ptr.vmem [resolvable:$false] %s2050_s26 }
  0x4b   : > { %s2052_s0 = scalar_lea.vmem %s2051_s26, 256  ;;  %p2053_p4 = scmp.lt.s32.totalorder %s336_s2, %s2051_s26 }
  0x4c   : > { %p2049_p2 = pneg %p2048_p13  ;;  %p2054_p6 = scmp.lt.s32.totalorder %s2052_s0, %s2045_s21 }
  0x4e   : > { %p2055_p12 = por %p2054_p6, %p2053_p4 }
  0x50   : > { %p2056_p0 = pnand %p2055_p12, %p2049_p2 }
  0x52   : > { %2059 = shalt.err (!%p2056_p0)
}
  0x53   : > { %1845 = dma.hbm_to_vmem [thread:$0]  (!%p2364_p7), %s333_s23, 128, %s336_s2, %s324_s12  }
  0x54   : > { %s346_s6 = scalar_lea.vmem [#allocation9], %s1677_s22  ;;  %s343_s16 = scalar_lea.sflag [#allocation10], %s342_s20 }
  0x55   : > { %s354_s14 = sshll.u32 %s346_s6, 4  ;;  %s2188_s17 = smov [#allocation9]   ;;  %s355_s14 = int_to_ptr.vmem [resolvable:$true] %s354_s14 }
  0x56   : > { %s2073_s24 = scalar_lea.vmem %s355_s14, 128  ;;  %s2078_s26 = sshll.u32 %s2188_s17, 4  ;;  %s2079_s26 = int_to_ptr.vmem [resolvable:$false] %s2078_s26 }
  0x57   : > { %p2074_p3 = scmp.ne.s32.totalorder %s355_s14, %s2073_s24  ;;  %s2080_s0 = scalar_lea.vmem %s2079_s26, 256 }
  0x58   : > { %p2081_p9 = scmp.lt.s32.totalorder %s355_s14, %s2079_s26  ;;  %p2082_p13 = scmp.lt.s32.totalorder %s2080_s0, %s2073_s24 }
  0x59   : > { %p2076_p10 = pnand %p2074_p3, %p2034_p1 }
  0x5a   : > { %p2083_p2 = por %p2082_p13, %p2081_p9 }
  0x5b   : > { %p2077_p11 = pneg %p2076_p10 }
  0x5d   : > { %p2084_p4 = pnand %p2083_p2, %p2077_p11 }
  0x5f   : > { %2087 = shalt.err (!%p2084_p4)
}
  0x60   : > { %1848 = dma.hbm_to_vmem [thread:$0]  (!%p2364_p7), %s2371_s19, 128, %s355_s14, %s343_s16  }
  0x61   : > { %363 = sbr.rel (%p2299_p8) target bundleno = 1510 (0x5e6), region = 52  ;;  %s2390_s2 = sand.u32 (!%p2299_p8), 1, %s2164_s28  }
  0x62   : > { %s2393_s12 = sshll.u32 (!%p2299_p8), %s2390_s2, 3  ;;  %s366_s22 = scalar_lea.sflag (!%p2299_p8), [#allocation7], %s2390_s2 }
  0x63   : > { %s369_s23 = scalar_lea.vmem (!%p2299_p8), [#allocation6], %s2393_s12  ;;  %p2659_p1 = scmp.ne.s32.totalorder (!%p2299_p8), %s2646_s13, 0 }
  0x66   : > { %2139 = dma.done.wait (%p2659_p1), %s366_s22, 128  }
  0x67   : > { %2141 = vsyncadd (%p2659_p1), %s366_s22, 4294967168  ;;  %s374_s4 = sand.u32 1, %s2280_s11   ;;  %s378_s19 = scalar_lea.vmem [#allocation9], %s2393_s12 }
  0x68   : > { %s375_s15 = scalar_lea.sflag [#allocation10], %s374_s4 }
  0x69   : > { %2143 = dma.done.wait (%p2659_p1), %s375_s15, 128  }
  0x6a   : > { %2145 = vsyncadd (%p2659_p1), %s375_s15, 4294967168  ;;  %p2660_p8 = scmp.eq.s32.totalorder %s2280_s11, 0 }
  0x6c   : > { %2147 = dma.done.wait (%p2660_p8), [#allocation10], 512   ;;  %p2661_p7 = pmov %p2660_p8 }
  0x6e   : > { %2149 = vsyncadd (%p2661_p7), [#allocation10], 4294966784  ;;  %p2662_p6 = pmov %p2661_p7 }
  0x70   : > { %2151 = dma.done.wait (%p2662_p6), [#allocation13], 1024   ;;  %p2663_p12 = pmov %p2662_p6 }
  0x71   : > { %vm444_vm0 = vcmask 261120   ;;  %v2189_v0 = vmov 0.0   ;;  %vm2190_vm1 = vmmov 0   ;;  %v436_v1 = vld [vmem:[#allocation11 + $0x18] sm:$0xff]  ;;  %v435_v2 = vld [vmem:[#allocation11 + $0x10] sm:$0xff]  ;;  %v434_v5 = vld [vmem:[#allocation11 + $0x8] sm:$0xff] }
  0x72   : > { %2153 = vsyncadd (%p2663_p12), [#allocation13], 4294966272  ;;  %1741 = vmatprep.subr.mxu0 %v2189_v0  ;;  %1752 = vmatprep.subr.mxu1 %v2189_v0  ;;  %528 = vst.msk [vmem:[#allocation5] sm:$0xff] %vm444_vm0, %v2189_v0  ;;  %v533_v3 = vld [vmem:[#allocation12 + $0x18] sm:$0xff]  ;;  %v532_v4 = vld [vmem:[#allocation12 + $0x10] sm:$0xff]  ;;  %vm616_vm2 = vcmask 64512  }
  0x73   : > { %1749 = vmatprep.mubr.msk.f32.mxu0 %vm2190_vm1, %v2189_v0  ;;  %1760 = vmatprep.mubr.msk.f32.mxu1 %vm2190_vm1, %v2189_v0  ;;  %v531_v6 = vld [vmem:[#allocation12 + $0x8] sm:$0xff]  ;;  %v433_v7 = vld [vmem:[#allocation11] sm:$0xff]  ;;  %v529_v10 = vld [vmem:[%s378_s19] sm:$0xff]  ;;  %s2191_s6 = smov 112   ;;  %s2192_s14 = smov 120   ;;  %vm519_vm3 = vcmask 7168  }
  0x74   : > { %1742 = vmatpush3.msra.mxu0 %v436_v1  ;;  %1753 = vmatpush3.msra.mxu1 %v533_v3  ;;  %v530_v8 = vld [vmem:[#allocation12] sm:$0xff]  ;;  %v1688_v11 = vld [vmem:[%s2632_s3] ss:$0 sm:$0xff]  ;;  %s2193_s16 = smov 104   ;;  %v2194_v26 = vmov -inf   ;;  %524 = vst.msk [vmem:[#allocation4] sm:$0xff] %vm519_vm3, %v2189_v0 }
  0x75   : > { %1743 = vmatprep.subr.mxu0 %v2189_v0  ;;  %1754 = vmatprep.subr.mxu1 %v2189_v0  ;;  %v432_v9 = vld [vmem:[%s369_s23] sm:$0xff]  ;;  %v1690_v12 = vld [vmem:[%s2634_s5] ss:$0 sm:$0xff]  ;;  %520 = vst.msk [vmem:[#allocation3] sm:$0xff] %vm519_vm3, %v2194_v26  ;;  %521 = vst.msk [vmem:[#allocation3 + $0x8] sm:$0xff] %vm519_vm3, %v2194_v26  ;;  %v2195_v30 = vmov 0  }
  0x76   : > { %1744 = vmatpush3.msra.mxu0 %v435_v2  ;;  %1755 = vmatpush3.msra.mxu1 %v532_v4  ;;  %522 = vst.msk [vmem:[#allocation3 + $0x10] sm:$0xff] %vm519_vm3, %v2194_v26  ;;  %523 = vst.msk [vmem:[#allocation3 + $0x18] sm:$0xff] %vm519_vm3, %v2194_v26  ;;  %s2196_s24 = smov 96   ;;  %s2197_s17 = smov 88   ;;  %vm996_vm4 = vcmask 130112   ;;  %vm1192_vm5 = vcmask 195712  }
  0x77   : > { %1745 = vmatprep.subr.mxu0 %v2189_v0  ;;  %1756 = vmatprep.subr.mxu1 %v2189_v0  ;;  %525 = vst.msk [vmem:[#allocation4 + $0x8] sm:$0xff] %vm519_vm3, %v2189_v0  ;;  %526 = vst.msk [vmem:[#allocation4 + $0x10] sm:$0xff] %vm519_vm3, %v2189_v0  ;;  %s2198_s26 = smov 80   ;;  %s2199_s0 = smov 72   ;;  %vm1388_vm6 = vcmask 261312  }
  0x78   : > { %1746 = vmatpush3.msra.mxu0 %v434_v5  ;;  %1757 = vmatpush3.msra.mxu1 %v531_v6  ;;  %527 = vst.msk [vmem:[#allocation4 + $0x18] sm:$0xff] %vm519_vm3, %v2189_v0  ;;  %s2200_s22 = smov 8   ;;  %s2201_s23 = smov 16  }
  0x79   : > { %1747 = vmatprep.subr.mxu0 %v2189_v0  ;;  %1758 = vmatprep.subr.mxu1 %v2189_v0  ;;  %s2202_s4 = smov 24   ;;  %s1707_s11 = sshll.u32 %s2172_s30, 7 }
  0x7a   : > { %1748 = vmatpush3.msra.mxu0 %v433_v7  ;;  %1759 = vmatpush3.msra.mxu1 %v530_v8  ;;  %s427_s13 = scalar_lea.vmem [#allocation15], %s2393_s12 }
  0x7b   : > { %1750 = vmatmul.mubr.msk.f32.vlgmr.msra.gmra.mxu0 %vm444_vm0, %v432_v9  ;;  %1761 = vmatmul.mubr.msk.f32.vlgmr.msra.gmra.mxu1 %vm444_vm0, %v529_v10  ;;  %s1535_s20 = sshll.u32 %s427_s13, 4  ;;  %s1536_s20 = int_to_ptr.vmem [resolvable:$true] %s1535_s20 }
  0x7c   : > { %1763 = vmatprep.subr.mxu1 %v2189_v0  ;;  %1765 = vmatprep.mubr.msk.f32.mxu1 %vm2190_vm1, %v2189_v0  ;;  %v2490_v40 = vld [vmem:[#allocation3] sm:$0xff]  ;;  %v2500_v44 = vld [vmem:[#allocation3 + $0x8] sm:$0xff] }
  0x7d   : > { %1773 = vmatprep.subr.mxu0 %v2189_v0  ;;  %1775 = vmatprep.mubr.msk.f32.mxu0 %vm2190_vm1, %v2189_v0  ;;  %v2505_v47 = vld [vmem:[#allocation3 + $0x10] sm:$0xff]  ;;  %v2515_v51 = vld [vmem:[#allocation3 + $0x18] sm:$0xff] }
  0x7e   : > { %1928 = vset.pattern.permute.xlu1 %v2195_v30  ;;  %1929 = vset.pattern.permute.xlu0 %v2195_v30 }
 0x13b   : > { %v514_v13 = vpop.f32.mrf.mxu0  ;;  %v611_v14 = vpop.f32.mrf.mxu1 }
 0x13c   : > { %v515_v15 = vadd.f32 %v1688_v11, %v514_v13  ;;  %v2447_v16 = vadd.f32 %v1690_v12, %v611_v14 }
 0x13d   : > { %v1751_v17 = vpop.f32.mrf.mxu0  ;;  %v1762_v18 = vpop.f32.mrf.mxu1 }
 0x13e   : > { %518 = vst.msk [vmem:[#allocation2] sm:$0xff] %vm444_vm0, %v515_v15  ;;  %1003 = vrot.lane.b32.xlu1 %v2447_v16, %s2191_s6  ;;  %807 = vrot.lane.b32.xlu0 %v2447_v16, %s2192_s14 }
 0x13f   : > { %1764 = vmatpush3.xpose.msk.msra.mxu1 %vm616_vm2, %v2447_v16 }
 0x140   : > { %1768 = vmatprep.subr.mxu1 %v2189_v0 }
 0x145   : > { %v999_v19 = vld [vmem:[#allocation2] sm:$0xff] }
 0x146   : > { %1001 = vrot.lane.b32.xlu1 %v999_v19, %s2191_s6  ;;  %805 = vrot.lane.b32.xlu0 %v999_v19, %s2192_s14  ;;  %s2587_s14 = scalar_lea.hbm %s2637_s8, %s1707_s11 }
 0x147   : > { %1766 = vmatmul.mubr.msk.f32.vlgmr.msra.gmra.mxu1 %vm616_vm2, %v999_v19 }
 0x148   : > { %1770 = vmatprep.mubr.msk.f32.mxu1 %vm2190_vm1, %v2189_v0 }
 0x14a   : > { %1197 = vrot.lane.b32.xlu1 %v999_v19, %s2193_s16  ;;  %1199 = vrot.lane.b32.xlu0 %v2447_v16, %s2193_s16  ;;  %s1521_s16 = scalar_lea.sflag [#allocation8], %s2390_s2 }
 0x1b0   : > { %v808_v20 = vpop.permute.xlu0 %807  ;;  %v1004_v21 = vpop.permute.xlu1 %1003 }
 0x1b1   : > { %1774 = vmatpush3.xpose.msk.msra.mxu0 %vm616_vm2, %v808_v20 }
 0x1b2   : > { %1783 = vmatprep.subr.mxu0 %v2189_v0 }
 0x1b8   : > { %v806_v22 = vpop.permute.xlu0 %805  ;;  %v1002_v23 = vpop.permute.xlu1 %1001 }
 0x1b9   : > { %1776 = vmatmul.mubr.msk.f32.vlgmr.msra.gmra.mxu0 %vm616_vm2, %v806_v22 }
 0x1ba   : > { %1784 = vmatpush3.xpose.msk.msra.mxu0 %vm616_vm2, %v1004_v21  ;;  %1785 = vmatprep.mubr.msk.f32.mxu0 %vm2190_vm1, %v2189_v0  ;;  %v709_v21 = vld [vmem:[#allocation4] sm:$0xff] }
 0x1bb   : > { %1793 = vmatprep.subr.mxu0 %v2189_v0 }
 0x1bc   : > { %v1200_v24 = vpop.permute.xlu0 %1199  ;;  %v1198_v25 = vpop.permute.xlu1 %1197 }
 0x1bd   : > { %1786 = vmatmul.mubr.msk.f32.vlgmr.msra.gmra.mxu0 %vm616_vm2, %v1002_v23 }
 0x1be   : > { %1794 = vmatpush3.xpose.msk.msra.mxu0 %vm616_vm2, %v1200_v24  ;;  %1795 = vmatprep.mubr.msk.f32.mxu0 %vm2190_vm1, %v2189_v0 }
 0x1bf   : > { %1803 = vmatprep.subr.mxu0 %v2189_v0 }
 0x1c1   : > { %1796 = vmatmul.mubr.msk.f32.vlgmr.msra.gmra.mxu0 %vm616_vm2, %v1198_v25 }
 0x1c2   : > { %1811 = vmatprep.mubr.msk.f32.mxu0 %vm2190_vm1, %v2189_v0 }
 0x207   : > { %v689_v27 = vpop.f32.mrf.mxu1 }
 0x208   : > { %v694_v28 = vsel %vm616_vm2, %v689_v27, -inf }
 0x209   : > { %695 = vmax.xlane.f32.xlu0 %v694_v28  ;;  %v1767_v29 = vpop.f32.mrf.mxu1 }
 0x279   : > { %v879_v31 = vpop.f32.mrf.mxu0 }
 0x27a   : > { %v885_v32 = vsel %vm616_vm2, %v879_v31, -inf }
 0x27b   : > { %886 = vmax.xlane.f32.xlu1 %v885_v32  ;;  %v1777_v33 = vpop.f32.mrf.mxu0 }
 0x27d   : > { %v1075_v34 = vpop.f32.mrf.mxu0 }
 0x27e   : > { %v1081_v35 = vsel %vm616_vm2, %v1075_v34, -inf }
 0x27f   : > { %1082 = vmax.xlane.f32.xlu0 %v1081_v35  ;;  %v1787_v36 = vpop.f32.mrf.mxu0 }
 0x281   : > { %v1271_v37 = vpop.f32.mrf.mxu0 }
 0x282   : > { %v1277_v38 = vsel %vm616_vm2, %v1271_v37, -inf }
 0x283   : > { %1278 = vmax.xlane.f32.xlu0 %v1277_v38  ;;  %v1797_v39 = vpop.f32.mrf.mxu0 }
 0x292   : > { %v696_v41 = vpop.xlane.xlu0 %695 }
 0x293   : > { %v2493_v42 = vmax.f32 %v2490_v40, %v696_v41  ;;  %v793_v41 = vld [vmem:[#allocation5] sm:$0xff] }
 0x295   : > { %v698_v43 = vsub.f32 %v2490_v40, %v2493_v42  ;;  %802 = vst.msk [vmem:[#allocation3] sm:$0xff] %vm519_vm3, %v2493_v42  ;;  %703 = vperm.xlu1 %1928, %v2493_v42  }
 0x297   : > { %v699_v13 = vmul.f32 1.442695, %v698_v43 }
 0x304   : > { %v887_v45 = vpop.xlane.xlu1 %886 }
 0x305   : > { %v2503_v46 = vmax.f32 %v2500_v44, %v887_v45 }
 0x307   : > { %v889_v48 = vsub.f32 %v2500_v44, %v2503_v46  ;;  %998 = vst.msk [vmem:[#allocation3 + $0x8] sm:$0xff] %vm519_vm3, %v2503_v46  ;;  %894 = vperm.xlu0 %1929, %v2503_v46  }
 0x308   : > { %v1083_v49 = vpop.xlane.xlu0 %1082 }
 0x309   : > { %v2513_v50 = vmax.f32 %v2505_v47, %v1083_v49  ;;  %v890_v19 = vmul.f32 1.442695, %v889_v48 }
 0x30b   : > { %v1085_v52 = vsub.f32 %v2505_v47, %v2513_v50  ;;  %1194 = vst.msk [vmem:[#allocation3 + $0x10] sm:$0xff] %vm519_vm3, %v2513_v50  ;;  %1090 = vperm.xlu1 %1928, %v2513_v50  }
 0x30c   : > { %v1279_v53 = vpop.xlane.xlu0 %1278 }
 0x30d   : > { %v2523_v54 = vmax.f32 %v2515_v51, %v1279_v53  ;;  %v1086_v25 = vmul.f32 1.442695, %v1085_v52 }
 0x30f   : > { %v1281_v55 = vsub.f32 %v2515_v51, %v2523_v54  ;;  %1390 = vst.msk [vmem:[#allocation3 + $0x18] sm:$0xff] %vm519_vm3, %v2523_v54  ;;  %717 = vrot.lane.b32.xlu1 %v2447_v16, %s2196_s24  ;;  %s2088_s24 = scalar_lea.vmem %s1536_s20, 128 }
 0x310   : > { %v704_v56 = vpop.permute.xlu1 %703  ;;  %p2089_p0 = scmp.ne.s32.totalorder %s1536_s20, %s2088_s24 }
 0x311   : > { %v706_v57 = vsub.f32 %v689_v27, %v704_v56  ;;  %v1282_v26 = vmul.f32 1.442695, %v1281_v55  ;;  %v901_v27 = vld [vmem:[#allocation4 + $0x8] sm:$0xff] }
 0x312   : > { %p2090_p3 = pnand %p2089_p0, %p2345_p5 }
 0x313   : > { %908 = vrot.lane.b32.xlu1 %v2447_v16, %s2197_s17  ;;  %v707_v58 = vmul.f32 1.442695, %v706_v57  ;;  %s2203_s17 = smov [#allocation15]  }
 0x314   : > { %p2091_p10 = pneg %p2090_p3  ;;  %s2092_s30 = sshll.u32 %s2203_s17, 4  ;;  %s2093_s30 = int_to_ptr.vmem [resolvable:$false] %s2092_s30 }
 0x315   : > { %1930 = vpow2.f32 %v707_v58  ;;  %s2094_s12 = scalar_lea.vmem %s2093_s30, 256  ;;  %p2095_p11 = scmp.lt.s32.totalorder %s1536_s20, %s2093_s30 }
 0x316   : > { %p2096_p9 = scmp.lt.s32.totalorder %s2094_s12, %s2088_s24 }
 0x317   : > { %1286 = vperm.xlu1 %1928, %v2523_v54  }
 0x318   : > { %p2097_p13 = por %p2096_p9, %p2095_p11 }
 0x31a   : > { %p2098_p2 = pnand %p2097_p13, %p2091_p10 }
 0x31b   : > { %1104 = vrot.lane.b32.xlu1 %v2447_v16, %s2198_s26 }
 0x31f   : > { %1300 = vrot.lane.b32.xlu1 %v2447_v16, %s2199_s0 }
 0x322   : > { %v1931_v59 = vpop.eup %1930 }
 0x323   : > { %v711_v60 = vsel %vm616_vm2, %v1931_v59, 0.0 }
 0x343   : > { %712 = vadd.xlane.f32.xlu1 %v711_v60 }
 0x382   : > { %v895_v61 = vpop.permute.xlu0 %894 }
 0x383   : > { %v897_v62 = vsub.f32 %v879_v31, %v895_v61  ;;  %v1097_v31 = vld [vmem:[#allocation4 + $0x10] sm:$0xff]  ;;  %v1438_v61 = vld [vmem:[#allocation14 + $0x18] sm:$0xff] }
 0x384   : > { %1804 = vmatpush3.msra.mxu0 %v1438_v61 }
 0x385   : > { %v898_v63 = vmul.f32 1.442695, %v897_v62  ;;  %v1437_v62 = vld [vmem:[#allocation14 + $0x10] sm:$0xff]  ;;  %1805 = vmatprep.subr.mxu0 %v2189_v0 }
 0x386   : > { %v1091_v1 = vpop.permute.xlu1 %1090  ;;  %1806 = vmatpush3.msra.mxu0 %v1437_v62 }
 0x387   : > { %1932 = vpow2.f32 %v898_v63  ;;  %v1093_v2 = vsub.f32 %v1075_v34, %v1091_v1  ;;  %v1436_v63 = vld [vmem:[#allocation14 + $0x8] sm:$0xff]  ;;  %1807 = vmatprep.subr.mxu0 %v2189_v0  ;;  %v1435_v1 = vld [vmem:[#allocation14] sm:$0xff] }
 0x388   : > { %1808 = vmatpush3.msra.mxu0 %v1436_v63 }
 0x389   : > { %v1094_v3 = vmul.f32 1.442695, %v1093_v2  ;;  %1809 = vmatprep.subr.mxu0 %v2189_v0 }
 0x38a   : > { %v718_v4 = vpop.permute.xlu1 %717  ;;  %1810 = vmatpush3.msra.mxu0 %v1435_v1 }
 0x38b   : > { %1934 = vpow2.f32 %v1094_v3  ;;  %1769 = vmatpush3.msra.mxu1 %v718_v4 }
 0x38c   : > { %1771 = vmatmul.mubr.msk.f32.vlgmr.msra.gmra.mxu1 %vm616_vm2, %v1931_v59  ;;  %1778 = vmatprep.subr.mxu1 %v2189_v0 }
 0x38d   : > { %1780 = vmatprep.mubr.msk.f32.mxu1 %vm2190_vm1, %v2189_v0 }
 0x38e   : > { %v909_v5 = vpop.permute.xlu1 %908 }
 0x38f   : > { %1779 = vmatpush3.msra.mxu1 %v909_v5 }
 0x390   : > { %1788 = vmatprep.subr.mxu1 %v2189_v0 }
 0x392   : > { %v1287_v6 = vpop.permute.xlu1 %1286 }
 0x393   : > { %v1289_v7 = vsub.f32 %v1271_v37, %v1287_v6  ;;  %v1293_v37 = vld [vmem:[#allocation4 + $0x18] sm:$0xff] }
 0x394   : > { %v1933_v8 = vpop.eup %1932 }
 0x395   : > { %v1290_v9 = vmul.f32 1.442695, %v1289_v7  ;;  %1781 = vmatmul.mubr.msk.f32.vlgmr.msra.gmra.mxu1 %vm616_vm2, %v1933_v8  ;;  %v903_v10 = vsel %vm616_vm2, %v1933_v8, 0.0 }
 0x396   : > { %v1105_v11 = vpop.permute.xlu1 %1104  ;;  %904 = vadd.xlane.f32.xlu0 %v903_v10  ;;  %1790 = vmatprep.mubr.msk.f32.mxu1 %vm2190_vm1, %v2189_v0 }
 0x397   : > { %1936 = vpow2.f32 %v1290_v9  ;;  %1789 = vmatpush3.msra.mxu1 %v1105_v11 }
 0x398   : > { %v1935_v12 = vpop.eup %1934  ;;  %1798 = vmatprep.subr.mxu1 %v2189_v0  ;;  %1938 = vpow2.f32 %v699_v13 }
 0x399   : > { %1791 = vmatmul.mubr.msk.f32.vlgmr.msra.gmra.mxu1 %vm616_vm2, %v1935_v12  ;;  %v1099_v14 = vsel %vm616_vm2, %v1935_v12, 0.0  ;;  %1940 = vpow2.f32 %v890_v19 }
 0x39a   : > { %1100 = vadd.xlane.f32.xlu1 %v1099_v14  ;;  %v1301_v15 = vpop.permute.xlu1 %1300  ;;  %1800 = vmatprep.mubr.msk.f32.mxu1 %vm2190_vm1, %v2189_v0  ;;  %1942 = vpow2.f32 %v1086_v25 }
 0x39b   : > { %1799 = vmatpush3.msra.mxu1 %v1301_v15  ;;  %1944 = vpow2.f32 %v1282_v26 }
 0x3a4   : > { %v1937_v16 = vpop.eup %1936 }
 0x3a5   : > { %1801 = vmatmul.mubr.msk.f32.vlgmr.msra.gmra.mxu1 %vm616_vm2, %v1937_v16  ;;  %v1295_v17 = vsel %vm616_vm2, %v1937_v16, 0.0  ;;  %v1939_v18 = vpop.eup %1938 }
 0x3a6   : > { %1296 = vadd.xlane.f32.xlu0 %v1295_v17  ;;  %v1941_v20 = vpop.eup %1940  ;;  %v710_v22 = vmul.f32 %v1939_v18, %v709_v21 }
 0x3a7   : > { %v902_v28 = vmul.f32 %v1941_v20, %v901_v27  ;;  %v1943_v29 = vpop.eup %1942 }
 0x3a8   : > { %v1098_v33 = vmul.f32 %v1943_v29, %v1097_v31  ;;  %v1945_v36 = vpop.eup %1944 }
 0x3a9   : > { %v1294_v38 = vmul.f32 %v1945_v36, %v1293_v37 }
 0x3ab   : > { %796 = vperm.xlu1 %1928, %v1939_v18  }
 0x3bc   : > { %987 = vperm.xlu0 %1929, %v1941_v20  }
 0x3cc   : > { %v713_v23 = vpop.xlane.xlu1 %712 }
 0x3cd   : > { %v714_v24 = vadd.f32 %v713_v23, %v710_v22 }
 0x3cf   : > { %716 = vst.msk [vmem:[#allocation4] sm:$0xff] %vm519_vm3, %v714_v24 }
 0x3d6   : > { %v1394_v47 = vld [vmem:[#allocation4] sm:$0xff] }
 0x3d7   : > { %1946 = vrcp.f32 %v1394_v47 }
 0x3e4   : > { %v1947_v55 = vpop.eup %1946 }
 0x41f   : > { %v905_v30 = vpop.xlane.xlu0 %904 }
 0x420   : > { %v906_v32 = vadd.f32 %v905_v30, %v902_v28 }
 0x422   : > { %907 = vst.msk [vmem:[#allocation4 + $0x8] sm:$0xff] %vm519_vm3, %v906_v32 }
 0x423   : > { %v1101_v34 = vpop.xlane.xlu1 %1100 }
 0x424   : > { %v1102_v35 = vadd.f32 %v1101_v34, %v1098_v33 }
 0x426   : > { %1103 = vst.msk [vmem:[#allocation4 + $0x10] sm:$0xff] %vm519_vm3, %v1102_v35 }
 0x427   : > { %v797_v42 = vpop.permute.xlu1 %796 }
 0x428   : > { %v799_v43 = vmul.f32 %v797_v42, %v793_v41 }
 0x429   : > { %v1404_v52 = vld [vmem:[#allocation4 + $0x8] sm:$0xff] }
 0x42d   : > { %v1414_v49 = vld [vmem:[#allocation4 + $0x10] sm:$0xff] }
 0x42e   : > { %1948 = vrcp.f32 %v1414_v49 }
 0x42f   : > { %v1297_v39 = vpop.xlane.xlu0 %1296  ;;  %1950 = vrcp.f32 %v1404_v52 }
 0x430   : > { %v1298_v40 = vadd.f32 %v1297_v39, %v1294_v38 }
 0x432   : > { %1299 = vst.msk [vmem:[#allocation4 + $0x18] sm:$0xff] %vm519_vm3, %v1298_v40 }
 0x437   : > { %v988_v3 = vpop.permute.xlu0 %987 }
 0x439   : > { %v1424_v54 = vld [vmem:[#allocation4 + $0x18] sm:$0xff] }
 0x43a   : > { %1952 = vrcp.f32 %v1424_v54 }
 0x43b   : > { %v1949_v56 = vpop.eup %1948 }
 0x43c   : > { %v1951_v59 = vpop.eup %1950 }
 0x447   : > { %v1953_v60 = vpop.eup %1952 }
 0x44c   : > { %v789_v44 = vpop.f32.mrf.mxu1 }
 0x44d   : > { %v800_v45 = vadd.f32 %v799_v43, %v789_v44 }
 0x44e   : > { %v1772_v46 = vpop.f32.mrf.mxu1 }
 0x44f   : > { %801 = vst.msk [vmem:[#allocation5] sm:$0xff] %vm616_vm2, %v800_v45 }
 0x455   : > { %v980_v48 = vpop.f32.mrf.mxu1 }
 0x456   : > { %992 = vrot.lane.b32.xlu1 %v980_v48, %s2200_s22  ;;  %v984_v2 = vld [vmem:[#allocation5] sm:$0xff] }
 0x457   : > { %v1782_v50 = vpop.f32.mrf.mxu1  ;;  %v990_v4 = vmul.f32 %v988_v3, %v984_v2 }
 0x459   : > { %v1176_v51 = vpop.f32.mrf.mxu1 }
 0x45a   : > { %1183 = vperm.xlu1 %1928, %v1943_v29   ;;  %1188 = vrot.lane.b32.xlu0 %v1176_v51, %s2201_s23  ;;  %v1704_v29 = vld [vmem:[%s2636_s7] ss:$0 sm:$0xff] }
 0x45b   : > { %v1792_v53 = vpop.f32.mrf.mxu1 }
 0x45e   : > { %1379 = vperm.xlu1 %1928, %v1945_v36  }
 0x462   : > { %1399 = vperm.xlu1 %1928, %v1947_v55  }
 0x465   : > { %v1372_v57 = vpop.f32.mrf.mxu1 }
 0x466   : > { %1419 = vperm.xlu1 %1928, %v1949_v56   ;;  %1384 = vrot.lane.b32.xlu0 %v1372_v57, %s2202_s4 }
 0x467   : > { %v1802_v58 = vpop.f32.mrf.mxu1 }
 0x46a   : > { %1409 = vperm.xlu0 %1929, %v1951_v59  }
 0x46e   : > { %1429 = vperm.xlu0 %1929, %v1953_v60  }
 0x4c8   : > { %v993_v5 = vpop.permute.xlu1 %992 }
 0x4c9   : > { %v995_v6 = vadd.f32 %v993_v5, %v990_v4 }
 0x4cb   : > { %997 = vst.msk [vmem:[#allocation5] sm:$0xff] %vm996_vm4, %v995_v6 }
 0x4cc   : > { %v1189_v10 = vpop.permute.xlu0 %1188 }
 0x4d2   : > { %v1180_v8 = vld [vmem:[#allocation5] sm:$0xff] }
 0x4d5   : > { %v1184_v7 = vpop.permute.xlu1 %1183 }
 0x4d6   : > { %v1186_v9 = vmul.f32 %v1184_v7, %v1180_v8 }
 0x4d8   : > { %v1191_v11 = vadd.f32 %v1189_v10, %v1186_v9  ;;  %v1385_v14 = vpop.permute.xlu0 %1384 }
 0x4d9   : > { %v1380_v12 = vpop.permute.xlu1 %1379 }
 0x4da   : > { %1193 = vst.msk [vmem:[#allocation5] sm:$0xff] %vm1192_vm5, %v1191_v11 }
 0x4dd   : > { %v1400_v16 = vpop.permute.xlu1 %1399 }
 0x4e1   : > { %v1376_v13 = vld [vmem:[#allocation5] sm:$0xff]  ;;  %v1420_v22 = vpop.permute.xlu1 %1419 }
 0x4e2   : > { %v1382_v0 = vmul.f32 %v1380_v12, %v1376_v13 }
 0x4e4   : > { %v1387_v15 = vadd.f32 %v1385_v14, %v1382_v0 }
 0x4e5   : > { %v1410_v20 = vpop.permute.xlu0 %1409 }
 0x4e6   : > { %1389 = vst.msk [vmem:[#allocation5] sm:$0xff] %vm1388_vm6, %v1387_v15 }
 0x4e9   : > { %v1430_v26 = vpop.permute.xlu0 %1429 }
 0x4ed   : > { %v1396_v17 = vld [vmem:[#allocation5] sm:$0xff] }
 0x4ee   : > { %v1402_v18 = vmul.f32 %v1400_v16, %v1396_v17 }
 0x4f0   : > { %1403 = vst.msk [vmem:[#allocation5] sm:$0xff] %vm616_vm2, %v1402_v18 }
 0x4f7   : > { %v1406_v19 = vld [vmem:[#allocation5] sm:$0xff] }
 0x4f8   : > { %v1412_v21 = vmul.f32 %v1410_v20, %v1406_v19 }
 0x4fa   : > { %1413 = vst.msk [vmem:[#allocation5] sm:$0xff] %vm996_vm4, %v1412_v21 }
 0x501   : > { %v1416_v23 = vld [vmem:[#allocation5] sm:$0xff] }
 0x502   : > { %v1422_v24 = vmul.f32 %v1420_v22, %v1416_v23 }
 0x504   : > { %1423 = vst.msk [vmem:[#allocation5] sm:$0xff] %vm1192_vm5, %v1422_v24 }
 0x50b   : > { %v1426_v25 = vld [vmem:[#allocation5] sm:$0xff] }
 0x50c   : > { %v1432_v27 = vmul.f32 %v1430_v26, %v1426_v25 }
 0x50e   : > { %1433 = vst.msk [vmem:[#allocation5] sm:$0xff] %vm1388_vm6, %v1432_v27 }
 0x515   : > { %v1434_v28 = vld [vmem:[#allocation5] sm:$0xff] }
 0x516   : > { %1812 = vmatmul.mubr.msk.f32.vlgmr.msra.gmra.mxu0 %vm444_vm0, %v1434_v28 }
 0x5d6   : > { %v1515_v30 = vpop.f32.mrf.mxu0 }
 0x5d7   : > { %v1516_v31 = vadd.f32 %v1704_v29, %v1515_v30 }
 0x5d8   : > { %v1813_v32 = vpop.f32.mrf.mxu0 }
 0x5d9   : > { %1519 = vst [vmem:[%s427_s13] sm:$0xff] %v1516_v31 }
 0x5da   : > { %2101 = shalt.err (!%p2098_p2)
}
 0x5db   : > { %s2102_s26 = scalar_lea.hbm %s2587_s14, 128  ;;  %s2106_s22 = scalar_lea.hbm %s2637_s8, 256 }
 0x5dc   : > { %p2103_p4 = scmp.ne.s32.totalorder %s2587_s14, %s2102_s26  ;;  %p2107_p7 = scmp.lt.s32.totalorder %s2587_s14, %s2637_s8 }
 0x5dd   : > { %p2108_p6 = scmp.lt.s32.totalorder %s2106_s22, %s2102_s26 }
 0x5de   : > { %p2104_p1 = pnand %p2103_p4, %p2345_p5 }
 0x5df   : > { %p2109_p12 = por %p2108_p6, %p2107_p7 }
 0x5e0   : > { %p2105_p8 = pneg %p2104_p1 }
 0x5e2   : > { %p2110_p0 = pnand %p2109_p12, %p2105_p8 }
 0x5e4   : > { %2113 = shalt.err (!%p2110_p0)
}
 0x5e5   : > { %1830 = dma.vmem_to_hbm [thread:$0]  (%p2345_p5), %s1536_s20, 128, %s2587_s14, %s1521_s16  }
 0x5e6 PF: > { %s2664_s15 = sld [smem:[#allocation21_spill]]  ;;  %s1547_s19 = sand.u32 1, %s2160_s27  }
 0x5e7   : > { %p2666_p10 = scmp.ge.s32.totalorder %s2180_s10, 2  ;;  %s1548_s11 = scalar_lea.sflag [#allocation8], %s1547_s19 }
 0x5ec   : > { %p2665_p3 = scmp.ne.s32.totalorder %s2664_s15, 0 }
 0x5ee   : > { %p1850_p11 = pnand %p2666_p10, %p2665_p3 }
 0x5f0   : > { %p1851_p9 = pneg %p1850_p11 }
 0x5f2   : > { %2155 = dma.done.wait (%p1851_p9), %s1548_s11, 128  }
 0x5f3   : > { %2157 = vsyncadd (%p1851_p9), %s1548_s11, 4294967168  ;;  %s28_s10 = sadd.s32 1, %s2180_s10   ;;  %s2667_s18 = sld [smem:[#allocation22_spill]] }
 0x5f4   : > { %p25_p13 = scmp.ge.s32.totalorder %s28_s10, 4   ;;  %s2668_s27 = smov %s2164_s28 }
 0x5f5   : > { %s2669_s28 = smov %s2168_s29  ;;  %s2670_s29 = smov %s2357_s25 }
 0x5f6   : > { %s2671_s30 = smov %s2176_s9  ;;  %27 = sbr.rel (!%p25_p13) target bundleno = 14 (0xe), region = 136 }
 0x5f9   : > { %s2672_s9 = smov %s2667_s18 }
 0x5fb   :  { %1553 = vsyncpa [#allocation7], 1 }
 0x5fc   :  { %1555 = vsyncpa [#allocation7 + $0x1], 1 }
 0x5fd   :  { %1556 = vsyncpa [#allocation10], 1 }
 0x5fe   :  { %1558 = vsyncpa [#allocation10 + $0x1], 1 }
 0x5ff   :  { %1559 = vsyncpa [#allocation13], 1 }
 0x600   :  { %1560 = vsyncpa [#allocation8], 1 }
 0x601   :  { %1562 = vsyncpa [#allocation8 + $0x1], 1 }

// kernel: tpu_custom_call.1
= control target key start
LH: loop header
LB: loop body
LE: loop exit
PB: predicated region body
PF: predicated region fallthrough
CT: control target
= control target key end

     0   :  { %s2629_s0 = inlined_call_operand.hbm [shape: f32[2,8,32], index: 0, kind: input, shape index: {}]   ;;  %s2630_s1 = inlined_call_operand.hbm [shape: f32[2,8,32], index: 1, kind: input, shape index: {}]   ;;  %s2631_s2 = inlined_call_operand.hbm [shape: f32[32,32], index: 2, kind: input, shape index: {}]   ;;  %s2632_s3 = inlined_call_operand.vmem [shape: f32[1,32], index: 3, kind: input, shape index: {}]   ;;  %s2633_s4 = inlined_call_operand.hbm [shape: f32[32,64], index: 4, kind: input, shape index: {}]   ;;  %s2634_s5 = inlined_call_operand.vmem [shape: f32[1,64], index: 5, kind: input, shape index: {}]   ;;  %s2635_s6 = inlined_call_operand.hbm [shape: f32[32,128], index: 6, kind: input, shape index: {}]   ;;  %s2636_s7 = inlined_call_operand.vmem [shape: f32[1,128], index: 7, kind: input, shape index: {}]   ;;  %s2637_s8 = inlined_call_operand.hbm [shape: f32[2,8,128], index: 8, kind: output, shape index: {}]  }
   0x1   :  { %2642 = sst [smem:[#allocation23_spill]] %s2629_s0 }
   0x2   :  { %2643 = sst [smem:[#allocation24_spill]] %s2631_s2 }
   0x3   :  { %2644 = sst [smem:[#allocation25_spill]] %s2633_s4 }
   0x4   :  { %2645 = sst [smem:[#allocation26_spill]] %s2635_s6 }
   0x5   :  { %13 = vsyncpa [#allocation7], 0 }
   0x6   :  { %15 = vsyncpa [#allocation7 + $0x1], 0 }
   0x7   :  { %16 = vsyncpa [#allocation10], 0 }
   0x8   :  { %18 = vsyncpa [#allocation10 + $0x1], 0 }
   0x9   :  { %19 = vsyncpa [#allocation13], 0 }
   0xa   :  { %20 = vsyncpa [#allocation8], 0 }
   0xb   :  { %22 = vsyncpa [#allocation8 + $0x1], 0  ;;  %s2249_s27 = smov 0   ;;  %s2251_s28 = smov 0  }
   0xc   :  { %s2253_s29 = smov 0   ;;  %s2255_s30 = smov 0  }
   0xd   :  { %s2257_s9 = smov 0   ;;  %s2259_s10 = smov 0  }
   0xe LB: > { %s2280_s11 = sadd.s32 4294967295, %s2180_s10   ;;  %s1671_s12 = sadd.s32 4294967294, %s2180_s10   ;;  %s2180_s10 = sphi %s2259_s10, %s28_s10   ;;  %s2176_s9 = sphi %s2257_s9, %s2672_s9   ;;  %s2172_s30 = sphi %s2255_s30, %s2671_s30   ;;  %s2168_s29 = sphi %s2253_s29, %s2670_s29   ;;  %s2164_s28 = sphi %s2251_s28, %s2669_s28   ;;  %s2160_s27 = sphi %s2249_s27, %s2668_s27  }
   0xf   : > { %p69_p0 = scmp.ne.s32.totalorder %s2164_s28, %s2160_s27  ;;  %p2638_p1 = scmp.eq.s32.totalorder %s2280_s11, 0 }
  0x10   : > { %p255_p3 = scmp.eq.s32.totalorder %s1671_s12, 1  ;;  %p1672_p5 = scmp.ge.s32.totalorder %s2180_s10, 1 }
  0x11   : > { %p2289_p4 = por %p2638_p1, %p69_p0  ;;  %p262_p7 = scmp.lt.s32.totalorder %s2180_s10, 3 }
  0x12   : > { %p2294_p6 = por %p255_p3, %p69_p0  ;;  %s2182_s16 = smov [#allocation11]  }
  0x13   : > { %s2646_s13 = scalar_select %p2289_p4, 1, 0 }
  0x14   : > { %s2647_s14 = scalar_select %p2294_p6, 1, 0 }
  0x15   : > { %p2299_p8 = pnand %p1672_p5, %p262_p7  ;;  %s274_s17 = sshll.u32 %s2182_s16, 4  ;;  %s275_s17 = int_to_ptr.vmem [resolvable:$true] %s274_s17 }
  0x16   : > { %2648 = sst [smem:[#allocation21_spill]] %s2647_s14  ;;  %s2183_s19 = smov [#allocation12]  }
  0x17   : > { %p1832_p9 = pneg %p2299_p8  ;;  %s290_s20 = sshll.u32 %s2183_s19, 4  ;;  %s291_s20 = int_to_ptr.vmem [resolvable:$true] %s290_s20 }
  0x18   : > { %s2184_s21 = smov [#allocation14]   ;;  %s1965_s23 = scalar_lea.vmem %s275_s17, 512 }
  0x19   : > { %p2308_p11 = pnand %p1832_p9, %p2638_p1  ;;  %s306_s22 = sshll.u32 %s2184_s21, 4  ;;  %s307_s22 = int_to_ptr.vmem [resolvable:$true] %s306_s22 }
  0x1a   : > { %p1966_p13 = scmp.ne.s32.totalorder %s275_s17, %s1965_s23  ;;  %p1973_p5 = scmp.lt.s32.totalorder %s275_s17, %s275_s17 }
  0x1b   : > { %p1956_p12 = pneg %p2308_p11  ;;  %p1974_p7 = scmp.lt.s32.totalorder %s1965_s23, %s1965_s23 }
  0x1d   : > { %p1968_p0 = pnand %p1966_p13, %p1956_p12  ;;  %p1975_p9 = por %p1974_p7, %p1973_p5 }
  0x1f   : > { %p1969_p3 = pneg %p1968_p0 }
  0x21   : > { %p1976_p10 = pnand %p1975_p9, %p1969_p3 }
  0x23   : > { %1979 = shalt.err (!%p1976_p10)
}
  0x24   : > { %s2185_s24 = smov 128   ;;  %s2186_s25 = smov 8  }
  0x25   : > { %s2651_s2 = sld [smem:[#allocation24_spill]]  ;;  %s1991_s16 = scalar_lea.vmem %s291_s20, 512 }
  0x26   : > { %p1992_p1 = scmp.ne.s32.totalorder %s291_s20, %s1991_s16  ;;  %p1999_p2 = scmp.lt.s32.totalorder %s291_s20, %s291_s20 }
  0x27   : > { %p2000_p6 = scmp.lt.s32.totalorder %s1991_s16, %s1991_s16 }
  0x28   : > { %p1994_p13 = pnand %p1992_p1, %p1956_p12 }
  0x29   : > { %p2001_p5 = por %p2000_p6, %p1999_p2 }
  0x2a   : > { %p1995_p0 = pneg %p1994_p13 }
  0x2b   : > { %1835 = dma.hbm_to_vmem [thread:$0]  (!%p2308_p11), %s2651_s2, 512, %s275_s17, [#allocation10], %s2185_s24, %s2185_s24, %s2186_s25  }
  0x2c   : > { %p2002_p3 = pnand %p2001_p5, %p1995_p0 }
  0x2e   : > { %2005 = shalt.err (!%p2002_p3)
}
  0x2f   : > { %s2652_s4 = sld [smem:[#allocation25_spill]]  ;;  %s2017_s17 = scalar_lea.vmem %s307_s22, 512 }
  0x30   : > { %p2018_p10 = scmp.ne.s32.totalorder %s307_s22, %s2017_s17  ;;  %p2025_p9 = scmp.lt.s32.totalorder %s307_s22, %s307_s22 }
  0x31   : > { %p2026_p13 = scmp.lt.s32.totalorder %s2017_s17, %s2017_s17 }
  0x32   : > { %p2020_p7 = pnand %p2018_p10, %p1956_p12 }
  0x33   : > { %p2027_p4 = por %p2026_p13, %p2025_p9 }
  0x34   : > { %p2021_p1 = pneg %p2020_p7 }
  0x35   : > { %1838 = dma.hbm_to_vmem [thread:$0]  (!%p2308_p11), %s2652_s4, 512, %s291_s20, [#allocation13], %s2185_s24, %s2185_s24, %s2186_s25  }
  0x36   : > { %p2028_p2 = pnand %p2027_p4, %p2021_p1 }
  0x38   : > { %2031 = shalt.err (!%p2028_p2)
}
  0x39   : > { %s2653_s6 = sld [smem:[#allocation26_spill]]  ;;  %s56_s20 = sadd.s32 1, %s2168_s29 }
  0x3a   : > { %s47_s12 = sadd.s32 1, %s2176_s9  ;;  %p63_p4 = scmp.ne.s32.totalorder %s2168_s29, %s2164_s28 }
  0x3b   : > { %p49_p6 = scmp.ge.s32.totalorder %s47_s12, 2  ;;  %p64_p12 = scmp.eq.s32.totalorder %s2180_s10, 0 }
  0x3c   : > { %p2654_p0 = scmp.eq.s32.totalorder %s2280_s11, 1  ;;  %p1856_p3 = scmp.lt.s32.totalorder %s2180_s10, 2 }
  0x3d   : > { %s2674_s12 = smov (%p49_p6, %s47_s12), 0  ;;  %p65_p10 = por %p64_p12, %p63_p4 }
  0x3e   : > { %p2345_p5 = por %p2654_p0, %p63_p4  ;;  %2656 = sst [smem:[#allocation22_spill]] %s2674_s12 }
  0x3f   : > { %1841 = dma.hbm_to_vmem [thread:$0]  (!%p2308_p11), %s2653_s6, 512, %s307_s22, [#allocation13], %s2185_s24, %s2185_s24, %s2186_s25  }
  0x40   : > { %s323_s16 = sand.u32 1, %s2168_s29   ;;  %s51_s19 = ssub.s32 %s2176_s9, %s2674_s12 }
  0x41   : > { %p54_p11 = scmp.eq.s32.totalorder %s51_s19, 0  ;;  %s1677_s22 = sshll.u32 %s323_s16, 3 }
  0x42   : > { %s1678_s24 = sshll.u32 %s2176_s9, 7  ;;  %s2657_s0 = sld [smem:[#allocation23_spill]] }
  0x43   : > { %s2357_s25 = scalar_select %p54_p11, %s2168_s29, %s56_s20  }
  0x44   : > { %s327_s26 = scalar_lea.vmem [#allocation6], %s1677_s22  ;;  %p2364_p7 = pnand %p1856_p3, %p65_p10 }
  0x45   : > { %s335_s2 = sshll.u32 %s327_s26, 4  ;;  %s2371_s19 = scalar_lea.hbm %s2630_s1, %s1678_s24  ;;  %s336_s2 = int_to_ptr.vmem [resolvable:$true] %s335_s2 }
  0x46   : > { %s342_s20 = sand.u32 1, %s2180_s10   ;;  %s324_s12 = scalar_lea.sflag [#allocation7], %s323_s16 }
  0x47   : > { %p2034_p1 = pneg %p2364_p7  ;;  %s2045_s21 = scalar_lea.vmem %s336_s2, 128 }
  0x48   : > { %s333_s23 = scalar_lea.hbm %s2657_s0, %s1678_s24  ;;  %p2046_p9 = scmp.ne.s32.totalorder %s336_s2, %s2045_s21 }
  0x49   : > { %s2187_s17 = smov [#allocation6]  }
  0x4a   : > { %p2048_p13 = pnand %p2046_p9, %p2034_p1  ;;  %s2050_s26 = sshll.u32 %s2187_s17, 4  ;;  %s2051_s26 = int_to_ptr.vmem [resolvable:$false] %s2050_s26 }
  0x4b   : > { %s2052_s0 = scalar_lea.vmem %s2051_s26, 256  ;;  %p2053_p4 = scmp.lt.s32.totalorder %s336_s2, %s2051_s26 }
  0x4c   : > { %p2049_p2 = pneg %p2048_p13  ;;  %p2054_p6 = scmp.lt.s32.totalorder %s2052_s0, %s2045_s21 }
  0x4e   : > { %p2055_p12 = por %p2054_p6, %p2053_p4 }
  0x50   : > { %p2056_p0 = pnand %p2055_p12, %p2049_p2 }
  0x52   : > { %2059 = shalt.err (!%p2056_p0)
}
  0x53   : > { %1845 = dma.hbm_to_vmem [thread:$0]  (!%p2364_p7), %s333_s23, 128, %s336_s2, %s324_s12  }
  0x54   : > { %s346_s6 = scalar_lea.vmem [#allocation9], %s1677_s22  ;;  %s343_s16 = scalar_lea.sflag [#allocation10], %s342_s20 }
  0x55   : > { %s354_s14 = sshll.u32 %s346_s6, 4  ;;  %s2188_s17 = smov [#allocation9]   ;;  %s355_s14 = int_to_ptr.vmem [resolvable:$true] %s354_s14 }
  0x56   : > { %s2073_s24 = scalar_lea.vmem %s355_s14, 128  ;;  %s2078_s26 = sshll.u32 %s2188_s17, 4  ;;  %s2079_s26 = int_to_ptr.vmem [resolvable:$false] %s2078_s26 }
  0x57   : > { %p2074_p3 = scmp.ne.s32.totalorder %s355_s14, %s2073_s24  ;;  %s2080_s0 = scalar_lea.vmem %s2079_s26, 256 }
  0x58   : > { %p2081_p9 = scmp.lt.s32.totalorder %s355_s14, %s2079_s26  ;;  %p2082_p13 = scmp.lt.s32.totalorder %s2080_s0, %s2073_s24 }
  0x59   : > { %p2076_p10 = pnand %p2074_p3, %p2034_p1 }
  0x5a   : > { %p2083_p2 = por %p2082_p13, %p2081_p9 }
  0x5b   : > { %p2077_p11 = pneg %p2076_p10 }
  0x5d   : > { %p2084_p4 = pnand %p2083_p2, %p2077_p11 }
  0x5f   : > { %2087 = shalt.err (!%p2084_p4)
}
  0x60   : > { %1848 = dma.hbm_to_vmem [thread:$0]  (!%p2364_p7), %s2371_s19, 128, %s355_s14, %s343_s16  }
  0x61   : > { %363 = sbr.rel (%p2299_p8) target bundleno = 1510 (0x5e6), region = 52  ;;  %s2390_s2 = sand.u32 (!%p2299_p8), 1, %s2164_s28  }
  0x62   : > { %s2393_s12 = sshll.u32 (!%p2299_p8), %s2390_s2, 3  ;;  %s366_s22 = scalar_lea.sflag (!%p2299_p8), [#allocation7], %s2390_s2 }
  0x63   : > { %s369_s23 = scalar_lea.vmem (!%p2299_p8), [#allocation6], %s2393_s12  ;;  %p2659_p1 = scmp.ne.s32.totalorder (!%p2299_p8), %s2646_s13, 0 }
  0x66   : > { %2139 = dma.done.wait (%p2659_p1), %s366_s22, 128  }
  0x67   : > { %2141 = vsyncadd (%p2659_p1), %s366_s22, 4294967168  ;;  %s374_s4 = sand.u32 1, %s2280_s11   ;;  %s378_s19 = scalar_lea.vmem [#allocation9], %s2393_s12 }
  0x68   : > { %s375_s15 = scalar_lea.sflag [#allocation10], %s374_s4 }
  0x69   : > { %2143 = dma.done.wait (%p2659_p1), %s375_s15, 128  }
  0x6a   : > { %2145 = vsyncadd (%p2659_p1), %s375_s15, 4294967168  ;;  %p2660_p8 = scmp.eq.s32.totalorder %s2280_s11, 0 }
  0x6c   : > { %2147 = dma.done.wait (%p2660_p8), [#allocation10], 512   ;;  %p2661_p7 = pmov %p2660_p8 }
  0x6e   : > { %2149 = vsyncadd (%p2661_p7), [#allocation10], 4294966784  ;;  %p2662_p6 = pmov %p2661_p7 }
  0x70   : > { %2151 = dma.done.wait (%p2662_p6), [#allocation13], 1024   ;;  %p2663_p12 = pmov %p2662_p6 }
  0x71   : > { %vm444_vm0 = vcmask 261120   ;;  %v2189_v0 = vmov 0.0   ;;  %vm2190_vm1 = vmmov 0   ;;  %v436_v1 = vld [vmem:[#allocation11 + $0x18] sm:$0xff]  ;;  %v435_v2 = vld [vmem:[#allocation11 + $0x10] sm:$0xff]  ;;  %v434_v5 = vld [vmem:[#allocation11 + $0x8] sm:$0xff] }
  0x72   : > { %2153 = vsyncadd (%p2663_p12), [#allocation13], 4294966272  ;;  %1741 = vmatprep.subr.mxu0 %v2189_v0  ;;  %1752 = vmatprep.subr.mxu1 %v2189_v0  ;;  %528 = vst.msk [vmem:[#allocation5] sm:$0xff] %vm444_vm0, %v2189_v0  ;;  %v533_v3 = vld [vmem:[#allocation12 + $0x18] sm:$0xff]  ;;  %v532_v4 = vld [vmem:[#allocation12 + $0x10] sm:$0xff]  ;;  %vm616_vm2 = vcmask 64512  }
  0x73   : > { %1749 = vmatprep.mubr.msk.f32.mxu0 %vm2190_vm1, %v2189_v0  ;;  %1760 = vmatprep.mubr.msk.f32.mxu1 %vm2190_vm1, %v2189_v0  ;;  %v531_v6 = vld [vmem:[#allocation12 + $0x8] sm:$0xff]  ;;  %v433_v7 = vld [vmem:[#allocation11] sm:$0xff]  ;;  %v529_v10 = vld [vmem:[%s378_s19] sm:$0xff]  ;;  %s2191_s6 = smov 112   ;;  %s2192_s14 = smov 120   ;;  %vm519_vm3 = vcmask 7168  }
  0x74   : > { %1742 = vmatpush3.msra.mxu0 %v436_v1  ;;  %1753 = vmatpush3.msra.mxu1 %v533_v3  ;;  %v530_v8 = vld [vmem:[#allocation12] sm:$0xff]  ;;  %v1688_v11 = vld [vmem:[%s2632_s3] ss:$0 sm:$0xff]  ;;  %s2193_s16 = smov 104   ;;  %v2194_v26 = vmov -inf   ;;  %524 = vst.msk [vmem:[#allocation4] sm:$0xff] %vm519_vm3, %v2189_v0 }
  0x75   : > { %1743 = vmatprep.subr.mxu0 %v2189_v0  ;;  %1754 = vmatprep.subr.mxu1 %v2189_v0  ;;  %v432_v9 = vld [vmem:[%s369_s23] sm:$0xff]  ;;  %v1690_v12 = vld [vmem:[%s2634_s5] ss:$0 sm:$0xff]  ;;  %520 = vst.msk [vmem:[#allocation3] sm:$0xff] %vm519_vm3, %v2194_v26  ;;  %521 = vst.msk [vmem:[#allocation3 + $0x8] sm:$0xff] %vm519_vm3, %v2194_v26  ;;  %v2195_v30 = vmov 0  }
  0x76   : > { %1744 = vmatpush3.msra.mxu0 %v435_v2  ;;  %1755 = vmatpush3.msra.mxu1 %v532_v4  ;;  %522 = vst.msk [vmem:[#allocation3 + $0x10] sm:$0xff] %vm519_vm3, %v2194_v26  ;;  %523 = vst.msk [vmem:[#allocation3 + $0x18] sm:$0xff] %vm519_vm3, %v2194_v26  ;;  %s2196_s24 = smov 96   ;;  %s2197_s17 = smov 88   ;;  %vm996_vm4 = vcmask 130112   ;;  %vm1192_vm5 = vcmask 195712  }
  0x77   : > { %1745 = vmatprep.subr.mxu0 %v2189_v0  ;;  %1756 = vmatprep.subr.mxu1 %v2189_v0  ;;  %525 = vst.msk [vmem:[#allocation4 + $0x8] sm:$0xff] %vm519_vm3, %v2189_v0  ;;  %526 = vst.msk [vmem:[#allocation4 + $0x10] sm:$0xff] %vm519_vm3, %v2189_v0  ;;  %s2198_s26 = smov 80   ;;  %s2199_s0 = smov 72   ;;  %vm1388_vm6 = vcmask 261312  }
  0x78   : > { %1746 = vmatpush3.msra.mxu0 %v434_v5  ;;  %1757 = vmatpush3.msra.mxu1 %v531_v6  ;;  %527 = vst.msk [vmem:[#allocation4 + $0x18] sm:$0xff] %vm519_vm3, %v2189_v0  ;;  %s2200_s22 = smov 8   ;;  %s2201_s23 = smov 16  }
  0x79   : > { %1747 = vmatprep.subr.mxu0 %v2189_v0  ;;  %1758 = vmatprep.subr.mxu1 %v2189_v0  ;;  %s2202_s4 = smov 24   ;;  %s1707_s11 = sshll.u32 %s2172_s30, 7 }
  0x7a   : > { %1748 = vmatpush3.msra.mxu0 %v433_v7  ;;  %1759 = vmatpush3.msra.mxu1 %v530_v8  ;;  %s427_s13 = scalar_lea.vmem [#allocation15], %s2393_s12 }
  0x7b   : > { %1750 = vmatmul.mubr.msk.f32.vlgmr.msra.gmra.mxu0 %vm444_vm0, %v432_v9  ;;  %1761 = vmatmul.mubr.msk.f32.vlgmr.msra.gmra.mxu1 %vm444_vm0, %v529_v10  ;;  %s1535_s20 = sshll.u32 %s427_s13, 4  ;;  %s1536_s20 = int_to_ptr.vmem [resolvable:$true] %s1535_s20 }
  0x7c   : > { %1763 = vmatprep.subr.mxu1 %v2189_v0  ;;  %1765 = vmatprep.mubr.msk.f32.mxu1 %vm2190_vm1, %v2189_v0  ;;  %v2490_v40 = vld [vmem:[#allocation3] sm:$0xff]  ;;  %v2500_v44 = vld [vmem:[#allocation3 + $0x8] sm:$0xff] }
  0x7d   : > { %1773 = vmatprep.subr.mxu0 %v2189_v0  ;;  %1775 = vmatprep.mubr.msk.f32.mxu0 %vm2190_vm1, %v2189_v0  ;;  %v2505_v47 = vld [vmem:[#allocation3 + $0x10] sm:$0xff]  ;;  %v2515_v51 = vld [vmem:[#allocation3 + $0x18] sm:$0xff] }
  0x7e   : > { %1928 = vset.pattern.permute.xlu1 %v2195_v30  ;;  %1929 = vset.pattern.permute.xlu0 %v2195_v30 }
 0x13b   : > { %v514_v13 = vpop.f32.mrf.mxu0  ;;  %v611_v14 = vpop.f32.mrf.mxu1 }
 0x13c   : > { %v515_v15 = vadd.f32 %v1688_v11, %v514_v13  ;;  %v2447_v16 = vadd.f32 %v1690_v12, %v611_v14 }
 0x13d   : > { %v1751_v17 = vpop.f32.mrf.mxu0  ;;  %v1762_v18 = vpop.f32.mrf.mxu1 }
 0x13e   : > { %518 = vst.msk [vmem:[#allocation2] sm:$0xff] %vm444_vm0, %v515_v15  ;;  %1003 = vrot.lane.b32.xlu1 %v2447_v16, %s2191_s6  ;;  %807 = vrot.lane.b32.xlu0 %v2447_v16, %s2192_s14 }
 0x13f   : > { %1764 = vmatpush3.xpose.msk.msra.mxu1 %vm616_vm2, %v2447_v16 }
 0x140   : > { %1768 = vmatprep.subr.mxu1 %v2189_v0 }
 0x145   : > { %v999_v19 = vld [vmem:[#allocation2] sm:$0xff] }
 0x146   : > { %1001 = vrot.lane.b32.xlu1 %v999_v19, %s2191_s6  ;;  %805 = vrot.lane.b32.xlu0 %v999_v19, %s2192_s14  ;;  %s2587_s14 = scalar_lea.hbm %s2637_s8, %s1707_s11 }
 0x147   : > { %1766 = vmatmul.mubr.msk.f32.vlgmr.msra.gmra.mxu1 %vm616_vm2, %v999_v19 }
 0x148   : > { %1770 = vmatprep.mubr.msk.f32.mxu1 %vm2190_vm1, %v2189_v0 }
 0x14a   : > { %1197 = vrot.lane.b32.xlu1 %v999_v19, %s2193_s16  ;;  %1199 = vrot.lane.b32.xlu0 %v2447_v16, %s2193_s16  ;;  %s1521_s16 = scalar_lea.sflag [#allocation8], %s2390_s2 }
 0x1b0   : > { %v808_v20 = vpop.permute.xlu0 %807  ;;  %v1004_v21 = vpop.permute.xlu1 %1003 }
 0x1b1   : > { %1774 = vmatpush3.xpose.msk.msra.mxu0 %vm616_vm2, %v808_v20 }
 0x1b2   : > { %1783 = vmatprep.subr.mxu0 %v2189_v0 }
 0x1b8   : > { %v806_v22 = vpop.permute.xlu0 %805  ;;  %v1002_v23 = vpop.permute.xlu1 %1001 }
 0x1b9   : > { %1776 = vmatmul.mubr.msk.f32.vlgmr.msra.gmra.mxu0 %vm616_vm2, %v806_v22 }
 0x1ba   : > { %1784 = vmatpush3.xpose.msk.msra.mxu0 %vm616_vm2, %v1004_v21  ;;  %1785 = vmatprep.mubr.msk.f32.mxu0 %vm2190_vm1, %v2189_v0  ;;  %v709_v21 = vld [vmem:[#allocation4] sm:$0xff] }
 0x1bb   : > { %1793 = vmatprep.subr.mxu0 %v2189_v0 }
 0x1bc   : > { %v1200_v24 = vpop.permute.xlu0 %1199  ;;  %v1198_v25 = vpop.permute.xlu1 %1197 }
 0x1bd   : > { %1786 = vmatmul.mubr.msk.f32.vlgmr.msra.gmra.mxu0 %vm616_vm2, %v1002_v23 }
 0x1be   : > { %1794 = vmatpush3.xpose.msk.msra.mxu0 %vm616_vm2, %v1200_v24  ;;  %1795 = vmatprep.mubr.msk.f32.mxu0 %vm2190_vm1, %v2189_v0 }
 0x1bf   : > { %1803 = vmatprep.subr.mxu0 %v2189_v0 }
 0x1c1   : > { %1796 = vmatmul.mubr.msk.f32.vlgmr.msra.gmra.mxu0 %vm616_vm2, %v1198_v25 }
 0x1c2   : > { %1811 = vmatprep.mubr.msk.f32.mxu0 %vm2190_vm1, %v2189_v0 }
 0x207   : > { %v689_v27 = vpop.f32.mrf.mxu1 }
 0x208   : > { %v694_v28 = vsel %vm616_vm2, %v689_v27, -inf }
 0x209   : > { %695 = vmax.xlane.f32.xlu0 %v694_v28  ;;  %v1767_v29 = vpop.f32.mrf.mxu1 }
 0x279   : > { %v879_v31 = vpop.f32.mrf.mxu0 }
 0x27a   : > { %v885_v32 = vsel %vm616_vm2, %v879_v31, -inf }
 0x27b   : > { %886 = vmax.xlane.f32.xlu1 %v885_v32  ;;  %v1777_v33 = vpop.f32.mrf.mxu0 }
 0x27d   : > { %v1075_v34 = vpop.f32.mrf.mxu0 }
 0x27e   : > { %v1081_v35 = vsel %vm616_vm2, %v1075_v34, -inf }
 0x27f   : > { %1082 = vmax.xlane.f32.xlu0 %v1081_v35  ;;  %v1787_v36 = vpop.f32.mrf.mxu0 }
 0x281   : > { %v1271_v37 = vpop.f32.mrf.mxu0 }
 0x282   : > { %v1277_v38 = vsel %vm616_vm2, %v1271_v37, -inf }
 0x283   : > { %1278 = vmax.xlane.f32.xlu0 %v1277_v38  ;;  %v1797_v39 = vpop.f32.mrf.mxu0 }
 0x292   : > { %v696_v41 = vpop.xlane.xlu0 %695 }
 0x293   : > { %v2493_v42 = vmax.f32 %v2490_v40, %v696_v41  ;;  %v793_v41 = vld [vmem:[#allocation5] sm:$0xff] }
 0x295   : > { %v698_v43 = vsub.f32 %v2490_v40, %v2493_v42  ;;  %802 = vst.msk [vmem:[#allocation3] sm:$0xff] %vm519_vm3, %v2493_v42  ;;  %703 = vperm.xlu1 %1928, %v2493_v42  }
 0x297   : > { %v699_v13 = vmul.f32 1.442695, %v698_v43 }
 0x304   : > { %v887_v45 = vpop.xlane.xlu1 %886 }
 0x305   : > { %v2503_v46 = vmax.f32 %v2500_v44, %v887_v45 }
 0x307   : > { %v889_v48 = vsub.f32 %v2500_v44, %v2503_v46  ;;  %998 = vst.msk [vmem:[#allocation3 + $0x8] sm:$0xff] %vm519_vm3, %v2503_v46  ;;  %894 = vperm.xlu0 %1929, %v2503_v46  }
 0x308   : > { %v1083_v49 = vpop.xlane.xlu0 %1082 }
 0x309   : > { %v2513_v50 = vmax.f32 %v2505_v47, %v1083_v49  ;;  %v890_v19 = vmul.f32 1.442695, %v889_v48 }
 0x30b   : > { %v1085_v52 = vsub.f32 %v2505_v47, %v2513_v50  ;;  %1194 = vst.msk [vmem:[#allocation3 + $0x10] sm:$0xff] %vm519_vm3, %v2513_v50  ;;  %1090 = vperm.xlu1 %1928, %v2513_v50  }
 0x30c   : > { %v1279_v53 = vpop.xlane.xlu0 %1278 }
 0x30d   : > { %v2523_v54 = vmax.f32 %v2515_v51, %v1279_v53  ;;  %v1086_v25 = vmul.f32 1.442695, %v1085_v52 }
 0x30f   : > { %v1281_v55 = vsub.f32 %v2515_v51, %v2523_v54  ;;  %1390 = vst.msk [vmem:[#allocation3 + $0x18] sm:$0xff] %vm519_vm3, %v2523_v54  ;;  %717 = vrot.lane.b32.xlu1 %v2447_v16, %s2196_s24  ;;  %s2088_s24 = scalar_lea.vmem %s1536_s20, 128 }
 0x310   : > { %v704_v56 = vpop.permute.xlu1 %703  ;;  %p2089_p0 = scmp.ne.s32.totalorder %s1536_s20, %s2088_s24 }
 0x311   : > { %v706_v57 = vsub.f32 %v689_v27, %v704_v56  ;;  %v1282_v26 = vmul.f32 1.442695, %v1281_v55  ;;  %v901_v27 = vld [vmem:[#allocation4 + $0x8] sm:$0xff] }
 0x312   : > { %p2090_p3 = pnand %p2089_p0, %p2345_p5 }
 0x313   : > { %908 = vrot.lane.b32.xlu1 %v2447_v16, %s2197_s17  ;;  %v707_v58 = vmul.f32 1.442695, %v706_v57  ;;  %s2203_s17 = smov [#allocation15]  }
 0x314   : > { %p2091_p10 = pneg %p2090_p3  ;;  %s2092_s30 = sshll.u32 %s2203_s17, 4  ;;  %s2093_s30 = int_to_ptr.vmem [resolvable:$false] %s2092_s30 }
 0x315   : > { %1930 = vpow2.f32 %v707_v58  ;;  %s2094_s12 = scalar_lea.vmem %s2093_s30, 256  ;;  %p2095_p11 = scmp.lt.s32.totalorder %s1536_s20, %s2093_s30 }
 0x316   : > { %p2096_p9 = scmp.lt.s32.totalorder %s2094_s12, %s2088_s24 }
 0x317   : > { %1286 = vperm.xlu1 %1928, %v2523_v54  }
 0x318   : > { %p2097_p13 = por %p2096_p9, %p2095_p11 }
 0x31a   : > { %p2098_p2 = pnand %p2097_p13, %p2091_p10 }
 0x31b   : > { %1104 = vrot.lane.b32.xlu1 %v2447_v16, %s2198_s26 }
 0x31f   : > { %1300 = vrot.lane.b32.xlu1 %v2447_v16, %s2199_s0 }
 0x322   : > { %v1931_v59 = vpop.eup %1930 }
 0x323   : > { %v711_v60 = vsel %vm616_vm2, %v1931_v59, 0.0 }
 0x343   : > { %712 = vadd.xlane.f32.xlu1 %v711_v60 }
 0x382   : > { %v895_v61 = vpop.permute.xlu0 %894 }
 0x383   : > { %v897_v62 = vsub.f32 %v879_v31, %v895_v61  ;;  %v1097_v31 = vld [vmem:[#allocation4 + $0x10] sm:$0xff]  ;;  %v1438_v61 = vld [vmem:[#allocation14 + $0x18] sm:$0xff] }
 0x384   : > { %1804 = vmatpush3.msra.mxu0 %v1438_v61 }
 0x385   : > { %v898_v63 = vmul.f32 1.442695, %v897_v62  ;;  %v1437_v62 = vld [vmem:[#allocation14 + $0x10] sm:$0xff]  ;;  %1805 = vmatprep.subr.mxu0 %v2189_v0 }
 0x386   : > { %v1091_v1 = vpop.permute.xlu1 %1090  ;;  %1806 = vmatpush3.msra.mxu0 %v1437_v62 }
 0x387   : > { %1932 = vpow2.f32 %v898_v63  ;;  %v1093_v2 = vsub.f32 %v1075_v34, %v1091_v1  ;;  %v1436_v63 = vld [vmem:[#allocation14 + $0x8] sm:$0xff]  ;;  %1807 = vmatprep.subr.mxu0 %v2189_v0  ;;  %v1435_v1 = vld [vmem:[#allocation14] sm:$0xff] }
 0x388   : > { %1808 = vmatpush3.msra.mxu0 %v1436_v63 }
 0x389   : > { %v1094_v3 = vmul.f32 1.442695, %v1093_v2  ;;  %1809 = vmatprep.subr.mxu0 %v2189_v0 }
 0x38a   : > { %v718_v4 = vpop.permute.xlu1 %717  ;;  %1810 = vmatpush3.msra.mxu0 %v1435_v1 }
 0x38b   : > { %1934 = vpow2.f32 %v1094_v3  ;;  %1769 = vmatpush3.msra.mxu1 %v718_v4 }
 0x38c   : > { %1771 = vmatmul.mubr.msk.f32.vlgmr.msra.gmra.mxu1 %vm616_vm2, %v1931_v59  ;;  %1778 = vmatprep.subr.mxu1 %v2189_v0 }
 0x38d   : > { %1780 = vmatprep.mubr.msk.f32.mxu1 %vm2190_vm1, %v2189_v0 }
 0x38e   : > { %v909_v5 = vpop.permute.xlu1 %908 }
 0x38f   : > { %1779 = vmatpush3.msra.mxu1 %v909_v5 }
 0x390   : > { %1788 = vmatprep.subr.mxu1 %v2189_v0 }
 0x392   : > { %v1287_v6 = vpop.permute.xlu1 %1286 }
 0x393   : > { %v1289_v7 = vsub.f32 %v1271_v37, %v1287_v6  ;;  %v1293_v37 = vld [vmem:[#allocation4 + $0x18] sm:$0xff] }
 0x394   : > { %v1933_v8 = vpop.eup %1932 }
 0x395   : > { %v1290_v9 = vmul.f32 1.442695, %v1289_v7  ;;  %1781 = vmatmul.mubr.msk.f32.vlgmr.msra.gmra.mxu1 %vm616_vm2, %v1933_v8  ;;  %v903_v10 = vsel %vm616_vm2, %v1933_v8, 0.0 }
 0x396   : > { %v1105_v11 = vpop.permute.xlu1 %1104  ;;  %904 = vadd.xlane.f32.xlu0 %v903_v10  ;;  %1790 = vmatprep.mubr.msk.f32.mxu1 %vm2190_vm1, %v2189_v0 }
 0x397   : > { %1936 = vpow2.f32 %v1290_v9  ;;  %1789 = vmatpush3.msra.mxu1 %v1105_v11 }
 0x398   : > { %v1935_v12 = vpop.eup %1934  ;;  %1798 = vmatprep.subr.mxu1 %v2189_v0  ;;  %1938 = vpow2.f32 %v699_v13 }
 0x399   : > { %1791 = vmatmul.mubr.msk.f32.vlgmr.msra.gmra.mxu1 %vm616_vm2, %v1935_v12  ;;  %v1099_v14 = vsel %vm616_vm2, %v1935_v12, 0.0  ;;  %1940 = vpow2.f32 %v890_v19 }
 0x39a   : > { %1100 = vadd.xlane.f32.xlu1 %v1099_v14  ;;  %v1301_v15 = vpop.permute.xlu1 %1300  ;;  %1800 = vmatprep.mubr.msk.f32.mxu1 %vm2190_vm1, %v2189_v0  ;;  %1942 = vpow2.f32 %v1086_v25 }
 0x39b   : > { %1799 = vmatpush3.msra.mxu1 %v1301_v15  ;;  %1944 = vpow2.f32 %v1282_v26 }
 0x3a4   : > { %v1937_v16 = vpop.eup %1936 }
 0x3a5   : > { %1801 = vmatmul.mubr.msk.f32.vlgmr.msra.gmra.mxu1 %vm616_vm2, %v1937_v16  ;;  %v1295_v17 = vsel %vm616_vm2, %v1937_v16, 0.0  ;;  %v1939_v18 = vpop.eup %1938 }
 0x3a6   : > { %1296 = vadd.xlane.f32.xlu0 %v1295_v17  ;;  %v1941_v20 = vpop.eup %1940  ;;  %v710_v22 = vmul.f32 %v1939_v18, %v709_v21 }
 0x3a7   : > { %v902_v28 = vmul.f32 %v1941_v20, %v901_v27  ;;  %v1943_v29 = vpop.eup %1942 }
 0x3a8   : > { %v1098_v33 = vmul.f32 %v1943_v29, %v1097_v31  ;;  %v1945_v36 = vpop.eup %1944 }
 0x3a9   : > { %v1294_v38 = vmul.f32 %v1945_v36, %v1293_v37 }
 0x3ab   : > { %796 = vperm.xlu1 %1928, %v1939_v18  }
 0x3bc   : > { %987 = vperm.xlu0 %1929, %v1941_v20  }
 0x3cc   : > { %v713_v23 = vpop.xlane.xlu1 %712 }
 0x3cd   : > { %v714_v24 = vadd.f32 %v713_v23, %v710_v22 }
 0x3cf   : > { %716 = vst.msk [vmem:[#allocation4] sm:$0xff] %vm519_vm3, %v714_v24 }
 0x3d6   : > { %v1394_v47 = vld [vmem:[#allocation4] sm:$0xff] }
 0x3d7   : > { %1946 = vrcp.f32 %v1394_v47 }
 0x3e4   : > { %v1947_v55 = vpop.eup %1946 }
 0x41f   : > { %v905_v30 = vpop.xlane.xlu0 %904 }
 0x420   : > { %v906_v32 = vadd.f32 %v905_v30, %v902_v28 }
 0x422   : > { %907 = vst.msk [vmem:[#allocation4 + $0x8] sm:$0xff] %vm519_vm3, %v906_v32 }
 0x423   : > { %v1101_v34 = vpop.xlane.xlu1 %1100 }
 0x424   : > { %v1102_v35 = vadd.f32 %v1101_v34, %v1098_v33 }
 0x426   : > { %1103 = vst.msk [vmem:[#allocation4 + $0x10] sm:$0xff] %vm519_vm3, %v1102_v35 }
 0x427   : > { %v797_v42 = vpop.permute.xlu1 %796 }
 0x428   : > { %v799_v43 = vmul.f32 %v797_v42, %v793_v41 }
 0x429   : > { %v1404_v52 = vld [vmem:[#allocation4 + $0x8] sm:$0xff] }
 0x42d   : > { %v1414_v49 = vld [vmem:[#allocation4 + $0x10] sm:$0xff] }
 0x42e   : > { %1948 = vrcp.f32 %v1414_v49 }
 0x42f   : > { %v1297_v39 = vpop.xlane.xlu0 %1296  ;;  %1950 = vrcp.f32 %v1404_v52 }
 0x430   : > { %v1298_v40 = vadd.f32 %v1297_v39, %v1294_v38 }
 0x432   : > { %1299 = vst.msk [vmem:[#allocation4 + $0x18] sm:$0xff] %vm519_vm3, %v1298_v40 }
 0x437   : > { %v988_v3 = vpop.permute.xlu0 %987 }
 0x439   : > { %v1424_v54 = vld [vmem:[#allocation4 + $0x18] sm:$0xff] }
 0x43a   : > { %1952 = vrcp.f32 %v1424_v54 }
 0x43b   : > { %v1949_v56 = vpop.eup %1948 }
 0x43c   : > { %v1951_v59 = vpop.eup %1950 }
 0x447   : > { %v1953_v60 = vpop.eup %1952 }
 0x44c   : > { %v789_v44 = vpop.f32.mrf.mxu1 }
 0x44d   : > { %v800_v45 = vadd.f32 %v799_v43, %v789_v44 }
 0x44e   : > { %v1772_v46 = vpop.f32.mrf.mxu1 }
 0x44f   : > { %801 = vst.msk [vmem:[#allocation5] sm:$0xff] %vm616_vm2, %v800_v45 }
 0x455   : > { %v980_v48 = vpop.f32.mrf.mxu1 }
 0x456   : > { %992 = vrot.lane.b32.xlu1 %v980_v48, %s2200_s22  ;;  %v984_v2 = vld [vmem:[#allocation5] sm:$0xff] }
 0x457   : > { %v1782_v50 = vpop.f32.mrf.mxu1  ;;  %v990_v4 = vmul.f32 %v988_v3, %v984_v2 }
 0x459   : > { %v1176_v51 = vpop.f32.mrf.mxu1 }
 0x45a   : > { %1183 = vperm.xlu1 %1928, %v1943_v29   ;;  %1188 = vrot.lane.b32.xlu0 %v1176_v51, %s2201_s23  ;;  %v1704_v29 = vld [vmem:[%s2636_s7] ss:$0 sm:$0xff] }
 0x45b   : > { %v1792_v53 = vpop.f32.mrf.mxu1 }
 0x45e   : > { %1379 = vperm.xlu1 %1928, %v1945_v36  }
 0x462   : > { %1399 = vperm.xlu1 %1928, %v1947_v55  }
 0x465   : > { %v1372_v57 = vpop.f32.mrf.mxu1 }
 0x466   : > { %1419 = vperm.xlu1 %1928, %v1949_v56   ;;  %1384 = vrot.lane.b32.xlu0 %v1372_v57, %s2202_s4 }
 0x467   : > { %v1802_v58 = vpop.f32.mrf.mxu1 }
 0x46a   : > { %1409 = vperm.xlu0 %1929, %v1951_v59  }
 0x46e   : > { %1429 = vperm.xlu0 %1929, %v1953_v60  }
 0x4c8   : > { %v993_v5 = vpop.permute.xlu1 %992 }
 0x4c9   : > { %v995_v6 = vadd.f32 %v993_v5, %v990_v4 }
 0x4cb   : > { %997 = vst.msk [vmem:[#allocation5] sm:$0xff] %vm996_vm4, %v995_v6 }
 0x4cc   : > { %v1189_v10 = vpop.permute.xlu0 %1188 }
 0x4d2   : > { %v1180_v8 = vld [vmem:[#allocation5] sm:$0xff] }
 0x4d5   : > { %v1184_v7 = vpop.permute.xlu1 %1183 }
 0x4d6   : > { %v1186_v9 = vmul.f32 %v1184_v7, %v1180_v8 }
 0x4d8   : > { %v1191_v11 = vadd.f32 %v1189_v10, %v1186_v9  ;;  %v1385_v14 = vpop.permute.xlu0 %1384 }
 0x4d9   : > { %v1380_v12 = vpop.permute.xlu1 %1379 }
 0x4da   : > { %1193 = vst.msk [vmem:[#allocation5] sm:$0xff] %vm1192_vm5, %v1191_v11 }
 0x4dd   : > { %v1400_v16 = vpop.permute.xlu1 %1399 }
 0x4e1   : > { %v1376_v13 = vld [vmem:[#allocation5] sm:$0xff]  ;;  %v1420_v22 = vpop.permute.xlu1 %1419 }
 0x4e2   : > { %v1382_v0 = vmul.f32 %v1380_v12, %v1376_v13 }
 0x4e4   : > { %v1387_v15 = vadd.f32 %v1385_v14, %v1382_v0 }
 0x4e5   : > { %v1410_v20 = vpop.permute.xlu0 %1409 }
 0x4e6   : > { %1389 = vst.msk [vmem:[#allocation5] sm:$0xff] %vm1388_vm6, %v1387_v15 }
 0x4e9   : > { %v1430_v26 = vpop.permute.xlu0 %1429 }
 0x4ed   : > { %v1396_v17 = vld [vmem:[#allocation5] sm:$0xff] }
 0x4ee   : > { %v1402_v18 = vmul.f32 %v1400_v16, %v1396_v17 }
 0x4f0   : > { %1403 = vst.msk [vmem:[#allocation5] sm:$0xff] %vm616_vm2, %v1402_v18 }
 0x4f7   : > { %v1406_v19 = vld [vmem:[#allocation5] sm:$0xff] }
 0x4f8   : > { %v1412_v21 = vmul.f32 %v1410_v20, %v1406_v19 }
 0x4fa   : > { %1413 = vst.msk [vmem:[#allocation5] sm:$0xff] %vm996_vm4, %v1412_v21 }
 0x501   : > { %v1416_v23 = vld [vmem:[#allocation5] sm:$0xff] }
 0x502   : > { %v1422_v24 = vmul.f32 %v1420_v22, %v1416_v23 }
 0x504   : > { %1423 = vst.msk [vmem:[#allocation5] sm:$0xff] %vm1192_vm5, %v1422_v24 }
 0x50b   : > { %v1426_v25 = vld [vmem:[#allocation5] sm:$0xff] }
 0x50c   : > { %v1432_v27 = vmul.f32 %v1430_v26, %v1426_v25 }
 0x50e   : > { %1433 = vst.msk [vmem:[#allocation5] sm:$0xff] %vm1388_vm6, %v1432_v27 }
 0x515   : > { %v1434_v28 = vld [vmem:[#allocation5] sm:$0xff] }
 0x516   : > { %1812 = vmatmul.mubr.msk.f32.vlgmr.msra.gmra.mxu0 %vm444_vm0, %v1434_v28 }
 0x5d6   : > { %v1515_v30 = vpop.f32.mrf.mxu0 }
 0x5d7   : > { %v1516_v31 = vadd.f32 %v1704_v29, %v1515_v30 }
 0x5d8   : > { %v1813_v32 = vpop.f32.mrf.mxu0 }
 0x5d9   : > { %1519 = vst [vmem:[%s427_s13] sm:$0xff] %v1516_v31 }
 0x5da   : > { %2101 = shalt.err (!%p2098_p2)
}
 0x5db   : > { %s2102_s26 = scalar_lea.hbm %s2587_s14, 128  ;;  %s2106_s22 = scalar_lea.hbm %s2637_s8, 256 }
 0x5dc   : > { %p2103_p4 = scmp.ne.s32.totalorder %s2587_s14, %s2102_s26  ;;  %p2107_p7 = scmp.lt.s32.totalorder %s2587_s14, %s2637_s8 }
 0x5dd   : > { %p2108_p6 = scmp.lt.s32.totalorder %s2106_s22, %s2102_s26 }
 0x5de   : > { %p2104_p1 = pnand %p2103_p4, %p2345_p5 }
 0x5df   : > { %p2109_p12 = por %p2108_p6, %p2107_p7 }
 0x5e0   : > { %p2105_p8 = pneg %p2104_p1 }
 0x5e2   : > { %p2110_p0 = pnand %p2109_p12, %p2105_p8 }
 0x5e4   : > { %2113 = shalt.err (!%p2110_p0)
}
 0x5e5   : > { %1830 = dma.vmem_to_hbm [thread:$0]  (%p2345_p5), %s1536_s20, 128, %s2587_s14, %s1521_s16  }
 0x5e6 PF: > { %s2664_s15 = sld [smem:[#allocation21_spill]]  ;;  %s1547_s19 = sand.u32 1, %s2160_s27  }
 0x5e7   : > { %p2666_p10 = scmp.ge.s32.totalorder %s2180_s10, 2  ;;  %s1548_s11 = scalar_lea.sflag [#allocation8], %s1547_s19 }
 0x5ec   : > { %p2665_p3 = scmp.ne.s32.totalorder %s2664_s15, 0 }
 0x5ee   : > { %p1850_p11 = pnand %p2666_p10, %p2665_p3 }
 0x5f0   : > { %p1851_p9 = pneg %p1850_p11 }
 0x5f2   : > { %2155 = dma.done.wait (%p1851_p9), %s1548_s11, 128  }
 0x5f3   : > { %2157 = vsyncadd (%p1851_p9), %s1548_s11, 4294967168  ;;  %s28_s10 = sadd.s32 1, %s2180_s10   ;;  %s2667_s18 = sld [smem:[#allocation22_spill]] }
 0x5f4   : > { %p25_p13 = scmp.ge.s32.totalorder %s28_s10, 4   ;;  %s2668_s27 = smov %s2164_s28 }
 0x5f5   : > { %s2669_s28 = smov %s2168_s29  ;;  %s2670_s29 = smov %s2357_s25 }
 0x5f6   : > { %s2671_s30 = smov %s2176_s9  ;;  %27 = sbr.rel (!%p25_p13) target bundleno = 14 (0xe), region = 136 }
 0x5f9   : > { %s2672_s9 = smov %s2667_s18 }
 0x5fb   :  { %1553 = vsyncpa [#allocation7], 1 }
 0x5fc   :  { %1555 = vsyncpa [#allocation7 + $0x1], 1 }
 0x5fd   :  { %1556 = vsyncpa [#allocation10], 1 }
 0x5fe   :  { %1558 = vsyncpa [#allocation10 + $0x1], 1 }
 0x5ff   :  { %1559 = vsyncpa [#allocation13], 1 }
 0x600   :  { %1560 = vsyncpa [#allocation8], 1 }
 0x601   :  { %1562 = vsyncpa [#allocation8 + $0x1], 1 }

</bundles_post_ra>
